<compile_context>
chip_gen: v7x
topology: tpu7x:2x2x1
jax: 0.10.0
libtpu: 0.0.40
codegen_flags: <defaults>
</compile_context>

<pallas_src>
import math
from functools import partial

import jax
import jax.numpy as jnp
from jax import lax
from jax.experimental import pallas as pl
from jax.experimental.pallas import tpu as pltpu

# ---------------------------------------------------------------------------
# Config (small, shapes consistent with BertConfig semantics)
# ---------------------------------------------------------------------------
VOCAB_SIZE = 128
HIDDEN = 32
NUM_LAYERS = 2
NUM_HEADS = 4
HEAD_DIM = HIDDEN // NUM_HEADS
INTERMEDIATE = 64
MAX_POS = 32
TYPE_VOCAB = 2
INIT_RANGE = 0.02
LN_EPS = 1e-12

VMEM_SPEC = pl.BlockSpec(memory_space=pltpu.MemorySpace.VMEM)


# ---------------------------------------------------------------------------
# Fused BERT kernel: embeddings-LN -> all encoder layers -> pooler
# ---------------------------------------------------------------------------
def _bert_encoder_kernel(x_ref, mask_ref, eg_ref, eb_ref,
                         wqkv_ref, bqkv_ref, wo_ref, bo_ref, ln1g_ref, ln1b_ref,
                         wi_ref, bi_ref, wo2_ref, bo2_ref, ln2g_ref, ln2b_ref,
                         wp_ref, bp_ref,
                         layers_ref, pooled_ref, *, write_all_layers):
    f32 = jnp.float32
    bf16 = jnp.bfloat16
    B, S = mask_ref.shape
    L = wqkv_ref.shape[0]
    c_gelu = jnp.float32(math.sqrt(2.0 / math.pi))

    def layer_norm(y, g, b):
        mean = jnp.mean(y, axis=-1, keepdims=True)
        var = jnp.mean((y - mean) ** 2, axis=-1, keepdims=True)
        return (y - mean) * lax.rsqrt(var + jnp.float32(LN_EPS)) * g + b

    # (B, 1, S) additive mask: broadcasts over queries and heads in-kernel.
    mask_b = mask_ref[...][:, None, :]
    x = layer_norm(x_ref[...], eg_ref[...], eb_ref[...])          # (B*S, H) f32

    for l in range(L):
        # ---- fused Q|K|V projection (1/sqrt(d) pre-folded into Q cols) ----
        qkv = jnp.dot(x.astype(bf16), wqkv_ref[l],
                      preferred_element_type=f32) + bqkv_ref[l]    # (B*S, 3H)
        qkv3 = qkv.reshape(B, S, 3 * HIDDEN)                       # (B, S, 3H)

        # ---- multi-head self-attention, VMEM-resident, batch dim batched ----
        # TODO(synk): a single dot_general with both B and H as batch dims would
        # remove the remaining 4-way head unroll; kept single-batch-dim einsums
        # (the documented Mosaic-supported batched-matmul form).
        ctx_heads = []
        for h in range(NUM_HEADS):
            c0 = h * HEAD_DIM
            q = qkv3[:, :, c0:c0 + HEAD_DIM].astype(bf16)                       # (B,S,d)
            k = qkv3[:, :, HIDDEN + c0:HIDDEN + c0 + HEAD_DIM].astype(bf16)     # (B,S,d)
            v = qkv3[:, :, 2 * HIDDEN + c0:2 * HIDDEN + c0 + HEAD_DIM].astype(bf16)
            s = jnp.einsum('bqd,bkd->bqk', q, k,
                           preferred_element_type=f32) + mask_b                 # (B,S,S)
            s = s - jnp.max(s, axis=-1, keepdims=True)
            p = jnp.exp(s)
            p = p * pl.reciprocal(jnp.sum(p, axis=-1, keepdims=True),
                                  approx=True)
            ctx_heads.append(jnp.einsum('bqk,bkd->bqd', p.astype(bf16), v,
                                        preferred_element_type=f32))            # (B,S,d)
        ctx = jnp.concatenate(ctx_heads, axis=-1).reshape(B * S, HIDDEN)

        # ---- attention output projection + residual + LayerNorm ----
        attn_out = jnp.dot(ctx.astype(bf16), wo_ref[l],
                           preferred_element_type=f32) + bo_ref[l]
        x = layer_norm(attn_out + x, ln1g_ref[l], ln1b_ref[l])

        # ---- FFN: matmul + tanh-GELU (EUP) + matmul + residual + LayerNorm ----
        inter = jnp.dot(x.astype(bf16), wi_ref[l],
                        preferred_element_type=f32) + bi_ref[l]
        inter = 0.5 * inter * (1.0 + jnp.tanh(
            c_gelu * (inter + 0.044715 * inter * inter * inter)))
        ffn = jnp.dot(inter.astype(bf16), wo2_ref[l],
                      preferred_element_type=f32) + bo2_ref[l]
        x = layer_norm(ffn + x, ln2g_ref[l], ln2b_ref[l])

        if write_all_layers:
            layers_ref[l] = x.astype(layers_ref.dtype)

    if not write_all_layers:
        layers_ref[0] = x.astype(layers_ref.dtype)

    # ---- BertPooler epilogue: first-token slice + tanh linear ----
    first = x.reshape(B, S, HIDDEN)[:, 0, :]                       # (B, H)
    pooled = jnp.tanh(jnp.dot(first.astype(bf16), wp_ref[...],
                              preferred_element_type=f32) + bp_ref[...])
    pooled_ref[...] = pooled.astype(pooled_ref.dtype)


# ---------------------------------------------------------------------------
# Deterministic parameter init (mirrors init_bert_weights: Linear/Embedding
# weight ~ N(0, 0.02), biases = 0, LayerNorm weight = 1, bias = 0).
# ---------------------------------------------------------------------------
def init_params(key):
    keys = iter(jax.random.split(key, 64))

    def nrm(shape):
        return jax.random.normal(next(keys), shape, jnp.float32) * INIT_RANGE

    params = {
        "word_emb": nrm((VOCAB_SIZE, HIDDEN)),
        "pos_emb": nrm((MAX_POS, HIDDEN)),
        "type_emb": nrm((TYPE_VOCAB, HIDDEN)),
        "emb_ln_g": jnp.ones((HIDDEN,), jnp.float32),
        "emb_ln_b": jnp.zeros((HIDDEN,), jnp.float32),
        "layers": [],
        "wp": nrm((HIDDEN, HIDDEN)),
        "bp": jnp.zeros((HIDDEN,), jnp.float32),
    }
    for _ in range(NUM_LAYERS):
        params["layers"].append({
            "wq": nrm((HIDDEN, HIDDEN)), "bq": jnp.zeros((HIDDEN,), jnp.float32),
            "wk": nrm((HIDDEN, HIDDEN)), "bk": jnp.zeros((HIDDEN,), jnp.float32),
            "wv": nrm((HIDDEN, HIDDEN)), "bv": jnp.zeros((HIDDEN,), jnp.float32),
            "wo": nrm((HIDDEN, HIDDEN)), "bo": jnp.zeros((HIDDEN,), jnp.float32),
            "ln1_g": jnp.ones((HIDDEN,), jnp.float32),
            "ln1_b": jnp.zeros((HIDDEN,), jnp.float32),
            "wi": nrm((HIDDEN, INTERMEDIATE)), "bi": jnp.zeros((INTERMEDIATE,), jnp.float32),
            "wo2": nrm((INTERMEDIATE, HIDDEN)), "bo2": jnp.zeros((HIDDEN,), jnp.float32),
            "ln2_g": jnp.ones((HIDDEN,), jnp.float32),
            "ln2_b": jnp.zeros((HIDDEN,), jnp.float32),
        })
    return params


def prepare_params(params):
    """One-time weight prep (NOT per forward call): stack per-layer weights,
    fuse Q|K|V, fold the 1/sqrt(head_dim) attention scale into the Q columns,
    and pre-cast MXU weights to bf16."""
    bf16 = jnp.bfloat16
    scale = 1.0 / math.sqrt(HEAD_DIM)
    ls = params["layers"]
    return {
        "word_emb": params["word_emb"],
        "pos_emb": params["pos_emb"],
        "type_emb": params["type_emb"],
        "emb_ln_g": params["emb_ln_g"][None, :],
        "emb_ln_b": params["emb_ln_b"][None, :],
        "wqkv": jnp.stack([jnp.concatenate([l["wq"] * scale, l["wk"], l["wv"]], axis=1)
                           for l in ls]).astype(bf16),               # (L, H, 3H)
        "bqkv": jnp.stack([jnp.concatenate([l["bq"] * scale, l["bk"], l["bv"]])[None, :]
                           for l in ls]),                            # (L, 1, 3H)
        "wo": jnp.stack([l["wo"] for l in ls]).astype(bf16),
        "bo": jnp.stack([l["bo"][None, :] for l in ls]),
        "ln1g": jnp.stack([l["ln1_g"][None, :] for l in ls]),
        "ln1b": jnp.stack([l["ln1_b"][None, :] for l in ls]),
        "wi": jnp.stack([l["wi"] for l in ls]).astype(bf16),
        "bi": jnp.stack([l["bi"][None, :] for l in ls]),
        "wo2": jnp.stack([l["wo2"] for l in ls]).astype(bf16),
        "bo2": jnp.stack([l["bo2"][None, :] for l in ls]),
        "ln2g": jnp.stack([l["ln2_g"][None, :] for l in ls]),
        "ln2b": jnp.stack([l["ln2_b"][None, :] for l in ls]),
        "wp": params["wp"].astype(bf16),
        "bp": params["bp"][None, :],
    }


# ---------------------------------------------------------------------------
# BertModel.forward
# ---------------------------------------------------------------------------
@partial(jax.jit, static_argnames=("output_all_encoded_layers",))
def bert_forward(prep, input_ids, token_type_ids=None, attention_mask=None,
                 output_all_encoded_layers=True):
    B, S = input_ids.shape
    if attention_mask is None:
        attention_mask = jnp.ones_like(input_ids)
    if token_type_ids is None:
        token_type_ids = jnp.zeros_like(input_ids)

    # extended_attention_mask = (1 - mask) * -10000, kept as one (B, S) additive
    # mask; broadcast over heads/queries happens inside the kernel.
    ext_mask = (1.0 - attention_mask.astype(jnp.float32)) * -10000.0

    # --- BertEmbeddings ------------------------------------------------------
    # TODO(synk): embedding-table gathers stay plain-JAX indexing (no clean
    # Pallas gather win for tiny tables); dropout is identity (inference).
    pos_ids = jnp.arange(S)
    emb = (prep["word_emb"][input_ids]
           + prep["pos_emb"][pos_ids][None, :, :]
           + prep["type_emb"][token_type_ids])
    x = emb.reshape(B * S, HIDDEN).astype(jnp.float32)

    n_layer_out = NUM_LAYERS if output_all_encoded_layers else 1

    kernel_inputs = (x, ext_mask, prep["emb_ln_g"], prep["emb_ln_b"],
                     prep["wqkv"], prep["bqkv"], prep["wo"], prep["bo"],
                     prep["ln1g"], prep["ln1b"], prep["wi"], prep["bi"],
                     prep["wo2"], prep["bo2"], prep["ln2g"], prep["ln2b"],
                     prep["wp"], prep["bp"])

    # Advisory cost estimate for XLA scheduling around the fused custom call.
    flops_layer = (2 * B * S * HIDDEN * 3 * HIDDEN              # QKV
                   + 4 * B * NUM_HEADS * S * S * HEAD_DIM       # scores + ctx
                   + 2 * B * S * HIDDEN * HIDDEN                # out proj
                   + 4 * B * S * HIDDEN * INTERMEDIATE)         # FFN
    flops = NUM_LAYERS * flops_layer + 2 * B * HIDDEN * HIDDEN  # + pooler
    transc = NUM_LAYERS * (B * NUM_HEADS * S * S + B * S * INTERMEDIATE) + B * HIDDEN
    bytes_accessed = int(sum(a.size * a.dtype.itemsize for a in kernel_inputs)
                         + (n_layer_out * B * S * HIDDEN + B * HIDDEN) * 4)

    all_layers, pooled = pl.pallas_call(
        partial(_bert_encoder_kernel, write_all_layers=output_all_encoded_layers),
        out_shape=(
            jax.ShapeDtypeStruct((n_layer_out, B * S, HIDDEN), jnp.float32),
            jax.ShapeDtypeStruct((B, HIDDEN), jnp.float32),
        ),
        in_specs=[VMEM_SPEC] * len(kernel_inputs),
        out_specs=(VMEM_SPEC, VMEM_SPEC),
        compiler_params=pltpu.CompilerParams(vmem_limit_bytes=32 * 1024 * 1024),
        cost_estimate=pl.CostEstimate(flops=int(flops), transcendentals=int(transc),
                                      bytes_accessed=bytes_accessed),
    )(*kernel_inputs)

    pooled_output = pooled
    if output_all_encoded_layers:
        encoded_layers = [all_layers[l].reshape(B, S, HIDDEN)
                          for l in range(NUM_LAYERS)]
        return encoded_layers, pooled_output
    sequence_output = all_layers[0].reshape(B, S, HIDDEN)
    return sequence_output, pooled_output


# ---------------------------------------------------------------------------
if __name__ == "__main__":
    key = jax.random.PRNGKey(0)
    pkey, ikey = jax.random.split(key)
    params = init_params(pkey)
    prep = prepare_params(params)            # one-time fuse / stack / bf16 cast

    B, S = 2, 8
    input_ids = jax.random.randint(ikey, (B, S), 0, VOCAB_SIZE, dtype=jnp.int32)
    token_type_ids = jnp.array([[0, 0, 0, 0, 1, 1, 1, 1],
                                [0, 0, 1, 1, 1, 0, 0, 0]], dtype=jnp.int32)
    attention_mask = jnp.array([[1, 1, 1, 1, 1, 1, 1, 0],
                                [1, 1, 1, 1, 1, 0, 0, 0]], dtype=jnp.int32)

    encoded_layers, pooled = bert_forward(
        prep, input_ids, token_type_ids, attention_mask,
        output_all_encoded_layers=True)
    for layer_out in encoded_layers:
        jax.block_until_ready(layer_out)
    jax.block_until_ready(pooled)

    # Gated-output path: only the final layer slab is declared/written.
    seq_only, pooled2 = bert_forward(
        prep, input_ids, token_type_ids, attention_mask,
        output_all_encoded_layers=False)
    jax.block_until_ready(seq_only)
    jax.block_until_ready(pooled2)

    assert len(encoded_layers) == NUM_LAYERS
    assert encoded_layers[-1].shape == (B, S, HIDDEN)
    assert pooled.shape == (B, HIDDEN)
    assert seq_only.shape == (B, S, HIDDEN)
    assert jnp.all(jnp.isfinite(encoded_layers[-1]))
    assert jnp.all(jnp.isfinite(pooled))
    assert jnp.allclose(seq_only, encoded_layers[-1], atol=1e-5)
    print("KERNEL_OK")
</pallas_src>

<mosaic_0001>
module attributes {stable_mosaic.version = 11 : i64} {
  func.func @_bert_encoder_kernel(%arg0: memref<16x32xf32, #tpu.memory_space<vmem>>, %arg1: memref<2x8xf32, #tpu.memory_space<vmem>>, %arg2: memref<1x32xf32, #tpu.memory_space<vmem>>, %arg3: memref<1x32xf32, #tpu.memory_space<vmem>>, %arg4: memref<2x32x96xbf16, #tpu.memory_space<vmem>>, %arg5: memref<2x1x96xf32, #tpu.memory_space<vmem>>, %arg6: memref<2x32x32xbf16, #tpu.memory_space<vmem>>, %arg7: memref<2x1x32xf32, #tpu.memory_space<vmem>>, %arg8: memref<2x1x32xf32, #tpu.memory_space<vmem>>, %arg9: memref<2x1x32xf32, #tpu.memory_space<vmem>>, %arg10: memref<2x32x64xbf16, #tpu.memory_space<vmem>>, %arg11: memref<2x1x64xf32, #tpu.memory_space<vmem>>, %arg12: memref<2x64x32xbf16, #tpu.memory_space<vmem>>, %arg13: memref<2x1x32xf32, #tpu.memory_space<vmem>>, %arg14: memref<2x1x32xf32, #tpu.memory_space<vmem>>, %arg15: memref<2x1x32xf32, #tpu.memory_space<vmem>>, %arg16: memref<32x32xbf16, #tpu.memory_space<vmem>>, %arg17: memref<1x32xf32, #tpu.memory_space<vmem>>, %arg18: memref<2x16x32xf32, #tpu.memory_space<vmem>>, %arg19: memref<2x32xf32, #tpu.memory_space<vmem>>) attributes {dimension_semantics = [], scalar_prefetch = 0 : i64, scratch_operands = 0 : i64, tpu.core_type = #tpu.core_type<tc>} {
    %c0 = arith.constant 0 : index
    %c0_0 = arith.constant 0 : index
    %0 = vector.load %arg1[%c0, %c0_0] : memref<2x8xf32, #tpu.memory_space<vmem>>, vector<2x8xf32>
    %1 = vector.shape_cast %0 : vector<2x8xf32> to vector<2x1x8xf32>
    %c0_1 = arith.constant 0 : index
    %c0_2 = arith.constant 0 : index
    %2 = vector.load %arg0[%c0_1, %c0_2] : memref<16x32xf32, #tpu.memory_space<vmem>>, vector<16x32xf32>
    %c0_3 = arith.constant 0 : index
    %c0_4 = arith.constant 0 : index
    %3 = vector.load %arg2[%c0_3, %c0_4] : memref<1x32xf32, #tpu.memory_space<vmem>>, vector<1x32xf32>
    %c0_5 = arith.constant 0 : index
    %c0_6 = arith.constant 0 : index
    %4 = vector.load %arg3[%c0_5, %c0_6] : memref<1x32xf32, #tpu.memory_space<vmem>>, vector<1x32xf32>
    %cst = arith.constant dense<0.000000e+00> : vector<16xf32>
    %5 = vector.multi_reduction <add>, %2, %cst [1] : vector<16x32xf32> to vector<16xf32>
    %6 = vector.shape_cast %5 : vector<16xf32> to vector<16x1xf32>
    %cst_7 = arith.constant 3.200000e+01 : f32
    %7 = vector.broadcast %cst_7 : f32 to vector<16x1xf32>
    %8 = arith.divf %6, %7 : vector<16x1xf32>
    %9 = vector.broadcast %8 : vector<16x1xf32> to vector<16x32xf32>
    %10 = arith.subf %2, %9 : vector<16x32xf32>
    %11 = arith.mulf %10, %10 : vector<16x32xf32>
    %cst_8 = arith.constant dense<0.000000e+00> : vector<16xf32>
    %12 = vector.multi_reduction <add>, %11, %cst_8 [1] : vector<16x32xf32> to vector<16xf32>
    %13 = vector.shape_cast %12 : vector<16xf32> to vector<16x1xf32>
    %cst_9 = arith.constant 3.200000e+01 : f32
    %14 = vector.broadcast %cst_9 : f32 to vector<16x1xf32>
    %15 = arith.divf %13, %14 : vector<16x1xf32>
    %16 = vector.broadcast %8 : vector<16x1xf32> to vector<16x32xf32>
    %17 = arith.subf %2, %16 : vector<16x32xf32>
    %cst_10 = arith.constant 9.99999996E-13 : f32
    %18 = vector.broadcast %cst_10 : f32 to vector<16x1xf32>
    %19 = arith.addf %15, %18 : vector<16x1xf32>
    %20 = math.rsqrt %19 : vector<16x1xf32>
    %21 = vector.broadcast %20 : vector<16x1xf32> to vector<16x32xf32>
    %22 = arith.mulf %17, %21 : vector<16x32xf32>
    %23 = vector.broadcast %3 : vector<1x32xf32> to vector<16x32xf32>
    %24 = arith.mulf %22, %23 : vector<16x32xf32>
    %25 = vector.broadcast %4 : vector<1x32xf32> to vector<16x32xf32>
    %26 = arith.addf %24, %25 : vector<16x32xf32>
    %27 = arith.truncf %26 : vector<16x32xf32> to vector<16x32xbf16>
    %c0_11 = arith.constant 0 : index
    %c0_12 = arith.constant 0 : index
    %c0_13 = arith.constant 0 : index
    %28 = vector.load %arg4[%c0_11, %c0_12, %c0_13] : memref<2x32x96xbf16, #tpu.memory_space<vmem>>, vector<1x32x96xbf16>
    %29 = vector.shape_cast %28 : vector<1x32x96xbf16> to vector<32x96xbf16>
    %cst_14 = arith.constant dense<0.000000e+00> : vector<16x96xf32>
    %30 = tpu.matmul %27, %29, %cst_14 {dimension_numbers = #tpu.dot_dimension_numbers<[1], [0], [0], [1], [0, 0, 1, 1], [], []>} : vector<16x32xbf16>, vector<32x96xbf16>, vector<16x96xf32> -> vector<16x96xf32>
    %c0_15 = arith.constant 0 : index
    %c0_16 = arith.constant 0 : index
    %c0_17 = arith.constant 0 : index
    %31 = vector.load %arg5[%c0_15, %c0_16, %c0_17] : memref<2x1x96xf32, #tpu.memory_space<vmem>>, vector<1x1x96xf32>
    %32 = vector.shape_cast %31 : vector<1x1x96xf32> to vector<1x96xf32>
    %33 = vector.broadcast %32 : vector<1x96xf32> to vector<16x96xf32>
    %34 = arith.addf %30, %33 : vector<16x96xf32>
    %35 = vector.shape_cast %34 : vector<16x96xf32> to vector<2x8x96xf32>
    %36 = vector.extract_strided_slice %35 {offsets = [0, 0, 0], sizes = [2, 8, 8], strides = [1, 1, 1]} : vector<2x8x96xf32> to vector<2x8x8xf32>
    %37 = arith.truncf %36 : vector<2x8x8xf32> to vector<2x8x8xbf16>
    %38 = vector.extract_strided_slice %35 {offsets = [0, 0, 32], sizes = [2, 8, 8], strides = [1, 1, 1]} : vector<2x8x96xf32> to vector<2x8x8xf32>
    %39 = arith.truncf %38 : vector<2x8x8xf32> to vector<2x8x8xbf16>
    %40 = vector.extract_strided_slice %35 {offsets = [0, 0, 64], sizes = [2, 8, 8], strides = [1, 1, 1]} : vector<2x8x96xf32> to vector<2x8x8xf32>
    %41 = arith.truncf %40 : vector<2x8x8xf32> to vector<2x8x8xbf16>
    "tpu.trace_start"() <{level = 10 : i32, message = "bqd,bkd->bqk"}> : () -> ()
    %cst_18 = arith.constant dense<0.000000e+00> : vector<2x8x8xf32>
    %42 = tpu.matmul %37, %39, %cst_18 {dimension_numbers = #tpu.dot_dimension_numbers<[2], [2], [1], [1], [0, 0, 0, 1, 1, 1], [0], [0]>} : vector<2x8x8xbf16>, vector<2x8x8xbf16>, vector<2x8x8xf32> -> vector<2x8x8xf32>
    "tpu.trace_stop"() : () -> ()
    %43 = vector.broadcast %1 : vector<2x1x8xf32> to vector<2x8x8xf32>
    %44 = arith.addf %42, %43 : vector<2x8x8xf32>
    %cst_19 = arith.constant dense<0xFF800000> : vector<2x8xf32>
    %45 = vector.multi_reduction <maximumf>, %44, %cst_19 [2] : vector<2x8x8xf32> to vector<2x8xf32>
    %46 = vector.shape_cast %45 : vector<2x8xf32> to vector<2x8x1xf32>
    %47 = vector.broadcast %46 : vector<2x8x1xf32> to vector<2x8x8xf32>
    %48 = arith.subf %44, %47 : vector<2x8x8xf32>
    %49 = math.exp %48 : vector<2x8x8xf32>
    %cst_20 = arith.constant dense<0.000000e+00> : vector<2x8xf32>
    %50 = vector.multi_reduction <add>, %49, %cst_20 [2] : vector<2x8x8xf32> to vector<2x8xf32>
    %51 = vector.shape_cast %50 : vector<2x8xf32> to vector<2x8x1xf32>
    %52 = tpu.reciprocal %51 {approx = true} : vector<2x8x1xf32> -> vector<2x8x1xf32>
    %53 = vector.broadcast %52 : vector<2x8x1xf32> to vector<2x8x8xf32>
    %54 = arith.mulf %49, %53 : vector<2x8x8xf32>
    %55 = arith.truncf %54 : vector<2x8x8xf32> to vector<2x8x8xbf16>
    "tpu.trace_start"() <{level = 10 : i32, message = "bqk,bkd->bqd"}> : () -> ()
    %cst_21 = arith.constant dense<0.000000e+00> : vector<2x8x8xf32>
    %56 = tpu.matmul %55, %41, %cst_21 {dimension_numbers = #tpu.dot_dimension_numbers<[2], [1], [1], [2], [0, 0, 0, 1, 1, 2], [0], [0]>} : vector<2x8x8xbf16>, vector<2x8x8xbf16>, vector<2x8x8xf32> -> vector<2x8x8xf32>
    "tpu.trace_stop"() : () -> ()
    %57 = vector.extract_strided_slice %35 {offsets = [0, 0, 8], sizes = [2, 8, 8], strides = [1, 1, 1]} : vector<2x8x96xf32> to vector<2x8x8xf32>
    %58 = arith.truncf %57 : vector<2x8x8xf32> to vector<2x8x8xbf16>
    %59 = vector.extract_strided_slice %35 {offsets = [0, 0, 40], sizes = [2, 8, 8], strides = [1, 1, 1]} : vector<2x8x96xf32> to vector<2x8x8xf32>
    %60 = arith.truncf %59 : vector<2x8x8xf32> to vector<2x8x8xbf16>
    %61 = vector.extract_strided_slice %35 {offsets = [0, 0, 72], sizes = [2, 8, 8], strides = [1, 1, 1]} : vector<2x8x96xf32> to vector<2x8x8xf32>
    %62 = arith.truncf %61 : vector<2x8x8xf32> to vector<2x8x8xbf16>
    "tpu.trace_start"() <{level = 10 : i32, message = "bqd,bkd->bqk"}> : () -> ()
    %cst_22 = arith.constant dense<0.000000e+00> : vector<2x8x8xf32>
    %63 = tpu.matmul %58, %60, %cst_22 {dimension_numbers = #tpu.dot_dimension_numbers<[2], [2], [1], [1], [0, 0, 0, 1, 1, 1], [0], [0]>} : vector<2x8x8xbf16>, vector<2x8x8xbf16>, vector<2x8x8xf32> -> vector<2x8x8xf32>
    "tpu.trace_stop"() : () -> ()
    %64 = vector.broadcast %1 : vector<2x1x8xf32> to vector<2x8x8xf32>
    %65 = arith.addf %63, %64 : vector<2x8x8xf32>
    %cst_23 = arith.constant dense<0xFF800000> : vector<2x8xf32>
    %66 = vector.multi_reduction <maximumf>, %65, %cst_23 [2] : vector<2x8x8xf32> to vector<2x8xf32>
    %67 = vector.shape_cast %66 : vector<2x8xf32> to vector<2x8x1xf32>
    %68 = vector.broadcast %67 : vector<2x8x1xf32> to vector<2x8x8xf32>
    %69 = arith.subf %65, %68 : vector<2x8x8xf32>
    %70 = math.exp %69 : vector<2x8x8xf32>
    %cst_24 = arith.constant dense<0.000000e+00> : vector<2x8xf32>
    %71 = vector.multi_reduction <add>, %70, %cst_24 [2] : vector<2x8x8xf32> to vector<2x8xf32>
    %72 = vector.shape_cast %71 : vector<2x8xf32> to vector<2x8x1xf32>
    %73 = tpu.reciprocal %72 {approx = true} : vector<2x8x1xf32> -> vector<2x8x1xf32>
    %74 = vector.broadcast %73 : vector<2x8x1xf32> to vector<2x8x8xf32>
    %75 = arith.mulf %70, %74 : vector<2x8x8xf32>
    %76 = arith.truncf %75 : vector<2x8x8xf32> to vector<2x8x8xbf16>
    "tpu.trace_start"() <{level = 10 : i32, message = "bqk,bkd->bqd"}> : () -> ()
    %cst_25 = arith.constant dense<0.000000e+00> : vector<2x8x8xf32>
    %77 = tpu.matmul %76, %62, %cst_25 {dimension_numbers = #tpu.dot_dimension_numbers<[2], [1], [1], [2], [0, 0, 0, 1, 1, 2], [0], [0]>} : vector<2x8x8xbf16>, vector<2x8x8xbf16>, vector<2x8x8xf32> -> vector<2x8x8xf32>
    "tpu.trace_stop"() : () -> ()
    %78 = vector.extract_strided_slice %35 {offsets = [0, 0, 16], sizes = [2, 8, 8], strides = [1, 1, 1]} : vector<2x8x96xf32> to vector<2x8x8xf32>
    %79 = arith.truncf %78 : vector<2x8x8xf32> to vector<2x8x8xbf16>
    %80 = vector.extract_strided_slice %35 {offsets = [0, 0, 48], sizes = [2, 8, 8], strides = [1, 1, 1]} : vector<2x8x96xf32> to vector<2x8x8xf32>
    %81 = arith.truncf %80 : vector<2x8x8xf32> to vector<2x8x8xbf16>
    %82 = vector.extract_strided_slice %35 {offsets = [0, 0, 80], sizes = [2, 8, 8], strides = [1, 1, 1]} : vector<2x8x96xf32> to vector<2x8x8xf32>
    %83 = arith.truncf %82 : vector<2x8x8xf32> to vector<2x8x8xbf16>
    "tpu.trace_start"() <{level = 10 : i32, message = "bqd,bkd->bqk"}> : () -> ()
    %cst_26 = arith.constant dense<0.000000e+00> : vector<2x8x8xf32>
    %84 = tpu.matmul %79, %81, %cst_26 {dimension_numbers = #tpu.dot_dimension_numbers<[2], [2], [1], [1], [0, 0, 0, 1, 1, 1], [0], [0]>} : vector<2x8x8xbf16>, vector<2x8x8xbf16>, vector<2x8x8xf32> -> vector<2x8x8xf32>
    "tpu.trace_stop"() : () -> ()
    %85 = vector.broadcast %1 : vector<2x1x8xf32> to vector<2x8x8xf32>
    %86 = arith.addf %84, %85 : vector<2x8x8xf32>
    %cst_27 = arith.constant dense<0xFF800000> : vector<2x8xf32>
    %87 = vector.multi_reduction <maximumf>, %86, %cst_27 [2] : vector<2x8x8xf32> to vector<2x8xf32>
    %88 = vector.shape_cast %87 : vector<2x8xf32> to vector<2x8x1xf32>
    %89 = vector.broadcast %88 : vector<2x8x1xf32> to vector<2x8x8xf32>
    %90 = arith.subf %86, %89 : vector<2x8x8xf32>
    %91 = math.exp %90 : vector<2x8x8xf32>
    %cst_28 = arith.constant dense<0.000000e+00> : vector<2x8xf32>
    %92 = vector.multi_reduction <add>, %91, %cst_28 [2] : vector<2x8x8xf32> to vector<2x8xf32>
    %93 = vector.shape_cast %92 : vector<2x8xf32> to vector<2x8x1xf32>
    %94 = tpu.reciprocal %93 {approx = true} : vector<2x8x1xf32> -> vector<2x8x1xf32>
    %95 = vector.broadcast %94 : vector<2x8x1xf32> to vector<2x8x8xf32>
    %96 = arith.mulf %91, %95 : vector<2x8x8xf32>
    %97 = arith.truncf %96 : vector<2x8x8xf32> to vector<2x8x8xbf16>
    "tpu.trace_start"() <{level = 10 : i32, message = "bqk,bkd->bqd"}> : () -> ()
    %cst_29 = arith.constant dense<0.000000e+00> : vector<2x8x8xf32>
    %98 = tpu.matmul %97, %83, %cst_29 {dimension_numbers = #tpu.dot_dimension_numbers<[2], [1], [1], [2], [0, 0, 0, 1, 1, 2], [0], [0]>} : vector<2x8x8xbf16>, vector<2x8x8xbf16>, vector<2x8x8xf32> -> vector<2x8x8xf32>
    "tpu.trace_stop"() : () -> ()
    %99 = vector.extract_strided_slice %35 {offsets = [0, 0, 24], sizes = [2, 8, 8], strides = [1, 1, 1]} : vector<2x8x96xf32> to vector<2x8x8xf32>
    %100 = arith.truncf %99 : vector<2x8x8xf32> to vector<2x8x8xbf16>
    %101 = vector.extract_strided_slice %35 {offsets = [0, 0, 56], sizes = [2, 8, 8], strides = [1, 1, 1]} : vector<2x8x96xf32> to vector<2x8x8xf32>
    %102 = arith.truncf %101 : vector<2x8x8xf32> to vector<2x8x8xbf16>
    %103 = vector.extract_strided_slice %35 {offsets = [0, 0, 88], sizes = [2, 8, 8], strides = [1, 1, 1]} : vector<2x8x96xf32> to vector<2x8x8xf32>
    %104 = arith.truncf %103 : vector<2x8x8xf32> to vector<2x8x8xbf16>
    "tpu.trace_start"() <{level = 10 : i32, message = "bqd,bkd->bqk"}> : () -> ()
    %cst_30 = arith.constant dense<0.000000e+00> : vector<2x8x8xf32>
    %105 = tpu.matmul %100, %102, %cst_30 {dimension_numbers = #tpu.dot_dimension_numbers<[2], [2], [1], [1], [0, 0, 0, 1, 1, 1], [0], [0]>} : vector<2x8x8xbf16>, vector<2x8x8xbf16>, vector<2x8x8xf32> -> vector<2x8x8xf32>
    "tpu.trace_stop"() : () -> ()
    %106 = vector.broadcast %1 : vector<2x1x8xf32> to vector<2x8x8xf32>
    %107 = arith.addf %105, %106 : vector<2x8x8xf32>
    %cst_31 = arith.constant dense<0xFF800000> : vector<2x8xf32>
    %108 = vector.multi_reduction <maximumf>, %107, %cst_31 [2] : vector<2x8x8xf32> to vector<2x8xf32>
    %109 = vector.shape_cast %108 : vector<2x8xf32> to vector<2x8x1xf32>
    %110 = vector.broadcast %109 : vector<2x8x1xf32> to vector<2x8x8xf32>
    %111 = arith.subf %107, %110 : vector<2x8x8xf32>
    %112 = math.exp %111 : vector<2x8x8xf32>
    %cst_32 = arith.constant dense<0.000000e+00> : vector<2x8xf32>
    %113 = vector.multi_reduction <add>, %112, %cst_32 [2] : vector<2x8x8xf32> to vector<2x8xf32>
    %114 = vector.shape_cast %113 : vector<2x8xf32> to vector<2x8x1xf32>
    %115 = tpu.reciprocal %114 {approx = true} : vector<2x8x1xf32> -> vector<2x8x1xf32>
    %116 = vector.broadcast %115 : vector<2x8x1xf32> to vector<2x8x8xf32>
    %117 = arith.mulf %112, %116 : vector<2x8x8xf32>
    %118 = arith.truncf %117 : vector<2x8x8xf32> to vector<2x8x8xbf16>
    "tpu.trace_start"() <{level = 10 : i32, message = "bqk,bkd->bqd"}> : () -> ()
    %cst_33 = arith.constant dense<0.000000e+00> : vector<2x8x8xf32>
    %119 = tpu.matmul %118, %104, %cst_33 {dimension_numbers = #tpu.dot_dimension_numbers<[2], [1], [1], [2], [0, 0, 0, 1, 1, 2], [0], [0]>} : vector<2x8x8xbf16>, vector<2x8x8xbf16>, vector<2x8x8xf32> -> vector<2x8x8xf32>
    "tpu.trace_stop"() : () -> ()
    %120 = tpu.concatenate %56, %77, %98, %119 in 2 : vector<2x8x8xf32>, vector<2x8x8xf32>, vector<2x8x8xf32>, vector<2x8x8xf32> -> vector<2x8x32xf32>
    %121 = vector.shape_cast %120 : vector<2x8x32xf32> to vector<16x32xf32>
    %122 = arith.truncf %121 : vector<16x32xf32> to vector<16x32xbf16>
    %c0_34 = arith.constant 0 : index
    %c0_35 = arith.constant 0 : index
    %c0_36 = arith.constant 0 : index
    %123 = vector.load %arg6[%c0_34, %c0_35, %c0_36] : memref<2x32x32xbf16, #tpu.memory_space<vmem>>, vector<1x32x32xbf16>
    %124 = vector.shape_cast %123 : vector<1x32x32xbf16> to vector<32x32xbf16>
    %cst_37 = arith.constant dense<0.000000e+00> : vector<16x32xf32>
    %125 = tpu.matmul %122, %124, %cst_37 {dimension_numbers = #tpu.dot_dimension_numbers<[1], [0], [0], [1], [0, 0, 1, 1], [], []>} : vector<16x32xbf16>, vector<32x32xbf16>, vector<16x32xf32> -> vector<16x32xf32>
    %c0_38 = arith.constant 0 : index
    %c0_39 = arith.constant 0 : index
    %c0_40 = arith.constant 0 : index
    %126 = vector.load %arg7[%c0_38, %c0_39, %c0_40] : memref<2x1x32xf32, #tpu.memory_space<vmem>>, vector<1x1x32xf32>
    %127 = vector.shape_cast %126 : vector<1x1x32xf32> to vector<1x32xf32>
    %128 = vector.broadcast %127 : vector<1x32xf32> to vector<16x32xf32>
    %129 = arith.addf %125, %128 : vector<16x32xf32>
    %130 = arith.addf %129, %26 : vector<16x32xf32>
    %c0_41 = arith.constant 0 : index
    %c0_42 = arith.constant 0 : index
    %c0_43 = arith.constant 0 : index
    %131 = vector.load %arg8[%c0_41, %c0_42, %c0_43] : memref<2x1x32xf32, #tpu.memory_space<vmem>>, vector<1x1x32xf32>
    %132 = vector.shape_cast %131 : vector<1x1x32xf32> to vector<1x32xf32>
    %c0_44 = arith.constant 0 : index
    %c0_45 = arith.constant 0 : index
    %c0_46 = arith.constant 0 : index
    %133 = vector.load %arg9[%c0_44, %c0_45, %c0_46] : memref<2x1x32xf32, #tpu.memory_space<vmem>>, vector<1x1x32xf32>
    %134 = vector.shape_cast %133 : vector<1x1x32xf32> to vector<1x32xf32>
    %cst_47 = arith.constant dense<0.000000e+00> : vector<16xf32>
    %135 = vector.multi_reduction <add>, %130, %cst_47 [1] : vector<16x32xf32> to vector<16xf32>
    %136 = vector.shape_cast %135 : vector<16xf32> to vector<16x1xf32>
    %cst_48 = arith.constant 3.200000e+01 : f32
    %137 = vector.broadcast %cst_48 : f32 to vector<16x1xf32>
    %138 = arith.divf %136, %137 : vector<16x1xf32>
    %139 = vector.broadcast %138 : vector<16x1xf32> to vector<16x32xf32>
    %140 = arith.subf %130, %139 : vector<16x32xf32>
    %141 = arith.mulf %140, %140 : vector<16x32xf32>
    %cst_49 = arith.constant dense<0.000000e+00> : vector<16xf32>
    %142 = vector.multi_reduction <add>, %141, %cst_49 [1] : vector<16x32xf32> to vector<16xf32>
    %143 = vector.shape_cast %142 : vector<16xf32> to vector<16x1xf32>
    %cst_50 = arith.constant 3.200000e+01 : f32
    %144 = vector.broadcast %cst_50 : f32 to vector<16x1xf32>
    %145 = arith.divf %143, %144 : vector<16x1xf32>
    %146 = vector.broadcast %138 : vector<16x1xf32> to vector<16x32xf32>
    %147 = arith.subf %130, %146 : vector<16x32xf32>
    %cst_51 = arith.constant 9.99999996E-13 : f32
    %148 = vector.broadcast %cst_51 : f32 to vector<16x1xf32>
    %149 = arith.addf %145, %148 : vector<16x1xf32>
    %150 = math.rsqrt %149 : vector<16x1xf32>
    %151 = vector.broadcast %150 : vector<16x1xf32> to vector<16x32xf32>
    %152 = arith.mulf %147, %151 : vector<16x32xf32>
    %153 = vector.broadcast %132 : vector<1x32xf32> to vector<16x32xf32>
    %154 = arith.mulf %152, %153 : vector<16x32xf32>
    %155 = vector.broadcast %134 : vector<1x32xf32> to vector<16x32xf32>
    %156 = arith.addf %154, %155 : vector<16x32xf32>
    %157 = arith.truncf %156 : vector<16x32xf32> to vector<16x32xbf16>
    %c0_52 = arith.constant 0 : index
    %c0_53 = arith.constant 0 : index
    %c0_54 = arith.constant 0 : index
    %158 = vector.load %arg10[%c0_52, %c0_53, %c0_54] : memref<2x32x64xbf16, #tpu.memory_space<vmem>>, vector<1x32x64xbf16>
    %159 = vector.shape_cast %158 : vector<1x32x64xbf16> to vector<32x64xbf16>
    %cst_55 = arith.constant dense<0.000000e+00> : vector<16x64xf32>
    %160 = tpu.matmul %157, %159, %cst_55 {dimension_numbers = #tpu.dot_dimension_numbers<[1], [0], [0], [1], [0, 0, 1, 1], [], []>} : vector<16x32xbf16>, vector<32x64xbf16>, vector<16x64xf32> -> vector<16x64xf32>
    %c0_56 = arith.constant 0 : index
    %c0_57 = arith.constant 0 : index
    %c0_58 = arith.constant 0 : index
    %161 = vector.load %arg11[%c0_56, %c0_57, %c0_58] : memref<2x1x64xf32, #tpu.memory_space<vmem>>, vector<1x1x64xf32>
    %162 = vector.shape_cast %161 : vector<1x1x64xf32> to vector<1x64xf32>
    %163 = vector.broadcast %162 : vector<1x64xf32> to vector<16x64xf32>
    %164 = arith.addf %160, %163 : vector<16x64xf32>
    %cst_59 = arith.constant 5.000000e-01 : f32
    %165 = vector.broadcast %cst_59 : f32 to vector<16x64xf32>
    %166 = arith.mulf %165, %164 : vector<16x64xf32>
    %cst_60 = arith.constant 4.471500e-02 : f32
    %167 = vector.broadcast %cst_60 : f32 to vector<16x64xf32>
    %168 = arith.mulf %167, %164 : vector<16x64xf32>
    %169 = arith.mulf %168, %164 : vector<16x64xf32>
    %170 = arith.mulf %169, %164 : vector<16x64xf32>
    %171 = arith.addf %164, %170 : vector<16x64xf32>
    %cst_61 = arith.constant 0.797884583 : f32
    %172 = vector.broadcast %cst_61 : f32 to vector<16x64xf32>
    %173 = arith.mulf %172, %171 : vector<16x64xf32>
    %174 = math.tanh %173 : vector<16x64xf32>
    %cst_62 = arith.constant 1.000000e+00 : f32
    %175 = vector.broadcast %cst_62 : f32 to vector<16x64xf32>
    %176 = arith.addf %175, %174 : vector<16x64xf32>
    %177 = arith.mulf %166, %176 : vector<16x64xf32>
    %178 = arith.truncf %177 : vector<16x64xf32> to vector<16x64xbf16>
    %c0_63 = arith.constant 0 : index
    %c0_64 = arith.constant 0 : index
    %c0_65 = arith.constant 0 : index
    %179 = vector.load %arg12[%c0_63, %c0_64, %c0_65] : memref<2x64x32xbf16, #tpu.memory_space<vmem>>, vector<1x64x32xbf16>
    %180 = vector.shape_cast %179 : vector<1x64x32xbf16> to vector<64x32xbf16>
    %cst_66 = arith.constant dense<0.000000e+00> : vector<16x32xf32>
    %181 = tpu.matmul %178, %180, %cst_66 {dimension_numbers = #tpu.dot_dimension_numbers<[1], [0], [0], [1], [0, 0, 1, 1], [], []>} : vector<16x64xbf16>, vector<64x32xbf16>, vector<16x32xf32> -> vector<16x32xf32>
    %c0_67 = arith.constant 0 : index
    %c0_68 = arith.constant 0 : index
    %c0_69 = arith.constant 0 : index
    %182 = vector.load %arg13[%c0_67, %c0_68, %c0_69] : memref<2x1x32xf32, #tpu.memory_space<vmem>>, vector<1x1x32xf32>
    %183 = vector.shape_cast %182 : vector<1x1x32xf32> to vector<1x32xf32>
    %184 = vector.broadcast %183 : vector<1x32xf32> to vector<16x32xf32>
    %185 = arith.addf %181, %184 : vector<16x32xf32>
    %186 = arith.addf %185, %156 : vector<16x32xf32>
    %c0_70 = arith.constant 0 : index
    %c0_71 = arith.constant 0 : index
    %c0_72 = arith.constant 0 : index
    %187 = vector.load %arg14[%c0_70, %c0_71, %c0_72] : memref<2x1x32xf32, #tpu.memory_space<vmem>>, vector<1x1x32xf32>
    %188 = vector.shape_cast %187 : vector<1x1x32xf32> to vector<1x32xf32>
    %c0_73 = arith.constant 0 : index
    %c0_74 = arith.constant 0 : index
    %c0_75 = arith.constant 0 : index
    %189 = vector.load %arg15[%c0_73, %c0_74, %c0_75] : memref<2x1x32xf32, #tpu.memory_space<vmem>>, vector<1x1x32xf32>
    %190 = vector.shape_cast %189 : vector<1x1x32xf32> to vector<1x32xf32>
    %cst_76 = arith.constant dense<0.000000e+00> : vector<16xf32>
    %191 = vector.multi_reduction <add>, %186, %cst_76 [1] : vector<16x32xf32> to vector<16xf32>
    %192 = vector.shape_cast %191 : vector<16xf32> to vector<16x1xf32>
    %cst_77 = arith.constant 3.200000e+01 : f32
    %193 = vector.broadcast %cst_77 : f32 to vector<16x1xf32>
    %194 = arith.divf %192, %193 : vector<16x1xf32>
    %195 = vector.broadcast %194 : vector<16x1xf32> to vector<16x32xf32>
    %196 = arith.subf %186, %195 : vector<16x32xf32>
    %197 = arith.mulf %196, %196 : vector<16x32xf32>
    %cst_78 = arith.constant dense<0.000000e+00> : vector<16xf32>
    %198 = vector.multi_reduction <add>, %197, %cst_78 [1] : vector<16x32xf32> to vector<16xf32>
    %199 = vector.shape_cast %198 : vector<16xf32> to vector<16x1xf32>
    %cst_79 = arith.constant 3.200000e+01 : f32
    %200 = vector.broadcast %cst_79 : f32 to vector<16x1xf32>
    %201 = arith.divf %199, %200 : vector<16x1xf32>
    %202 = vector.broadcast %194 : vector<16x1xf32> to vector<16x32xf32>
    %203 = arith.subf %186, %202 : vector<16x32xf32>
    %cst_80 = arith.constant 9.99999996E-13 : f32
    %204 = vector.broadcast %cst_80 : f32 to vector<16x1xf32>
    %205 = arith.addf %201, %204 : vector<16x1xf32>
    %206 = math.rsqrt %205 : vector<16x1xf32>
    %207 = vector.broadcast %206 : vector<16x1xf32> to vector<16x32xf32>
    %208 = arith.mulf %203, %207 : vector<16x32xf32>
    %209 = vector.broadcast %188 : vector<1x32xf32> to vector<16x32xf32>
    %210 = arith.mulf %208, %209 : vector<16x32xf32>
    %211 = vector.broadcast %190 : vector<1x32xf32> to vector<16x32xf32>
    %212 = arith.addf %210, %211 : vector<16x32xf32>
    %c0_81 = arith.constant 0 : index
    %c0_82 = arith.constant 0 : index
    %c0_83 = arith.constant 0 : index
    %213 = vector.load %arg18[%c0_81, %c0_82, %c0_83] : memref<2x16x32xf32, #tpu.memory_space<vmem>>, vector<1x16x32xf32>
    %214 = vector.shape_cast %213 : vector<1x16x32xf32> to vector<16x32xf32>
    %215 = vector.shape_cast %212 : vector<16x32xf32> to vector<1x16x32xf32>
    tpu.vector_store %arg18[%c0_81, %c0_82, %c0_83], %215 {strides = array<i32>} : memref<2x16x32xf32, #tpu.memory_space<vmem>>, vector<1x16x32xf32>,
    %216 = arith.truncf %212 : vector<16x32xf32> to vector<16x32xbf16>
    %c1 = arith.constant 1 : index
    %c0_84 = arith.constant 0 : index
    %c0_85 = arith.constant 0 : index
    %217 = vector.load %arg4[%c1, %c0_84, %c0_85] : memref<2x32x96xbf16, #tpu.memory_space<vmem>>, vector<1x32x96xbf16>
    %218 = vector.shape_cast %217 : vector<1x32x96xbf16> to vector<32x96xbf16>
    %cst_86 = arith.constant dense<0.000000e+00> : vector<16x96xf32>
    %219 = tpu.matmul %216, %218, %cst_86 {dimension_numbers = #tpu.dot_dimension_numbers<[1], [0], [0], [1], [0, 0, 1, 1], [], []>} : vector<16x32xbf16>, vector<32x96xbf16>, vector<16x96xf32> -> vector<16x96xf32>
    %c1_87 = arith.constant 1 : index
    %c0_88 = arith.constant 0 : index
    %c0_89 = arith.constant 0 : index
    %220 = vector.load %arg5[%c1_87, %c0_88, %c0_89] : memref<2x1x96xf32, #tpu.memory_space<vmem>>, vector<1x1x96xf32>
    %221 = vector.shape_cast %220 : vector<1x1x96xf32> to vector<1x96xf32>
    %222 = vector.broadcast %221 : vector<1x96xf32> to vector<16x96xf32>
    %223 = arith.addf %219, %222 : vector<16x96xf32>
    %224 = vector.shape_cast %223 : vector<16x96xf32> to vector<2x8x96xf32>
    %225 = vector.extract_strided_slice %224 {offsets = [0, 0, 0], sizes = [2, 8, 8], strides = [1, 1, 1]} : vector<2x8x96xf32> to vector<2x8x8xf32>
    %226 = arith.truncf %225 : vector<2x8x8xf32> to vector<2x8x8xbf16>
    %227 = vector.extract_strided_slice %224 {offsets = [0, 0, 32], sizes = [2, 8, 8], strides = [1, 1, 1]} : vector<2x8x96xf32> to vector<2x8x8xf32>
    %228 = arith.truncf %227 : vector<2x8x8xf32> to vector<2x8x8xbf16>
    %229 = vector.extract_strided_slice %224 {offsets = [0, 0, 64], sizes = [2, 8, 8], strides = [1, 1, 1]} : vector<2x8x96xf32> to vector<2x8x8xf32>
    %230 = arith.truncf %229 : vector<2x8x8xf32> to vector<2x8x8xbf16>
    "tpu.trace_start"() <{level = 10 : i32, message = "bqd,bkd->bqk"}> : () -> ()
    %cst_90 = arith.constant dense<0.000000e+00> : vector<2x8x8xf32>
    %231 = tpu.matmul %226, %228, %cst_90 {dimension_numbers = #tpu.dot_dimension_numbers<[2], [2], [1], [1], [0, 0, 0, 1, 1, 1], [0], [0]>} : vector<2x8x8xbf16>, vector<2x8x8xbf16>, vector<2x8x8xf32> -> vector<2x8x8xf32>
    "tpu.trace_stop"() : () -> ()
    %232 = vector.broadcast %1 : vector<2x1x8xf32> to vector<2x8x8xf32>
    %233 = arith.addf %231, %232 : vector<2x8x8xf32>
    %cst_91 = arith.constant dense<0xFF800000> : vector<2x8xf32>
    %234 = vector.multi_reduction <maximumf>, %233, %cst_91 [2] : vector<2x8x8xf32> to vector<2x8xf32>
    %235 = vector.shape_cast %234 : vector<2x8xf32> to vector<2x8x1xf32>
    %236 = vector.broadcast %235 : vector<2x8x1xf32> to vector<2x8x8xf32>
    %237 = arith.subf %233, %236 : vector<2x8x8xf32>
    %238 = math.exp %237 : vector<2x8x8xf32>
    %cst_92 = arith.constant dense<0.000000e+00> : vector<2x8xf32>
    %239 = vector.multi_reduction <add>, %238, %cst_92 [2] : vector<2x8x8xf32> to vector<2x8xf32>
    %240 = vector.shape_cast %239 : vector<2x8xf32> to vector<2x8x1xf32>
    %241 = tpu.reciprocal %240 {approx = true} : vector<2x8x1xf32> -> vector<2x8x1xf32>
    %242 = vector.broadcast %241 : vector<2x8x1xf32> to vector<2x8x8xf32>
    %243 = arith.mulf %238, %242 : vector<2x8x8xf32>
    %244 = arith.truncf %243 : vector<2x8x8xf32> to vector<2x8x8xbf16>
    "tpu.trace_start"() <{level = 10 : i32, message = "bqk,bkd->bqd"}> : () -> ()
    %cst_93 = arith.constant dense<0.000000e+00> : vector<2x8x8xf32>
    %245 = tpu.matmul %244, %230, %cst_93 {dimension_numbers = #tpu.dot_dimension_numbers<[2], [1], [1], [2], [0, 0, 0, 1, 1, 2], [0], [0]>} : vector<2x8x8xbf16>, vector<2x8x8xbf16>, vector<2x8x8xf32> -> vector<2x8x8xf32>
    "tpu.trace_stop"() : () -> ()
    %246 = vector.extract_strided_slice %224 {offsets = [0, 0, 8], sizes = [2, 8, 8], strides = [1, 1, 1]} : vector<2x8x96xf32> to vector<2x8x8xf32>
    %247 = arith.truncf %246 : vector<2x8x8xf32> to vector<2x8x8xbf16>
    %248 = vector.extract_strided_slice %224 {offsets = [0, 0, 40], sizes = [2, 8, 8], strides = [1, 1, 1]} : vector<2x8x96xf32> to vector<2x8x8xf32>
    %249 = arith.truncf %248 : vector<2x8x8xf32> to vector<2x8x8xbf16>
    %250 = vector.extract_strided_slice %224 {offsets = [0, 0, 72], sizes = [2, 8, 8], strides = [1, 1, 1]} : vector<2x8x96xf32> to vector<2x8x8xf32>
    %251 = arith.truncf %250 : vector<2x8x8xf32> to vector<2x8x8xbf16>
    "tpu.trace_start"() <{level = 10 : i32, message = "bqd,bkd->bqk"}> : () -> ()
    %cst_94 = arith.constant dense<0.000000e+00> : vector<2x8x8xf32>
    %252 = tpu.matmul %247, %249, %cst_94 {dimension_numbers = #tpu.dot_dimension_numbers<[2], [2], [1], [1], [0, 0, 0, 1, 1, 1], [0], [0]>} : vector<2x8x8xbf16>, vector<2x8x8xbf16>, vector<2x8x8xf32> -> vector<2x8x8xf32>
    "tpu.trace_stop"() : () -> ()
    %253 = vector.broadcast %1 : vector<2x1x8xf32> to vector<2x8x8xf32>
    %254 = arith.addf %252, %253 : vector<2x8x8xf32>
    %cst_95 = arith.constant dense<0xFF800000> : vector<2x8xf32>
    %255 = vector.multi_reduction <maximumf>, %254, %cst_95 [2] : vector<2x8x8xf32> to vector<2x8xf32>
    %256 = vector.shape_cast %255 : vector<2x8xf32> to vector<2x8x1xf32>
    %257 = vector.broadcast %256 : vector<2x8x1xf32> to vector<2x8x8xf32>
    %258 = arith.subf %254, %257 : vector<2x8x8xf32>
    %259 = math.exp %258 : vector<2x8x8xf32>
    %cst_96 = arith.constant dense<0.000000e+00> : vector<2x8xf32>
    %260 = vector.multi_reduction <add>, %259, %cst_96 [2] : vector<2x8x8xf32> to vector<2x8xf32>
    %261 = vector.shape_cast %260 : vector<2x8xf32> to vector<2x8x1xf32>
    %262 = tpu.reciprocal %261 {approx = true} : vector<2x8x1xf32> -> vector<2x8x1xf32>
    %263 = vector.broadcast %262 : vector<2x8x1xf32> to vector<2x8x8xf32>
    %264 = arith.mulf %259, %263 : vector<2x8x8xf32>
    %265 = arith.truncf %264 : vector<2x8x8xf32> to vector<2x8x8xbf16>
    "tpu.trace_start"() <{level = 10 : i32, message = "bqk,bkd->bqd"}> : () -> ()
    %cst_97 = arith.constant dense<0.000000e+00> : vector<2x8x8xf32>
    %266 = tpu.matmul %265, %251, %cst_97 {dimension_numbers = #tpu.dot_dimension_numbers<[2], [1], [1], [2], [0, 0, 0, 1, 1, 2], [0], [0]>} : vector<2x8x8xbf16>, vector<2x8x8xbf16>, vector<2x8x8xf32> -> vector<2x8x8xf32>
    "tpu.trace_stop"() : () -> ()
    %267 = vector.extract_strided_slice %224 {offsets = [0, 0, 16], sizes = [2, 8, 8], strides = [1, 1, 1]} : vector<2x8x96xf32> to vector<2x8x8xf32>
    %268 = arith.truncf %267 : vector<2x8x8xf32> to vector<2x8x8xbf16>
    %269 = vector.extract_strided_slice %224 {offsets = [0, 0, 48], sizes = [2, 8, 8], strides = [1, 1, 1]} : vector<2x8x96xf32> to vector<2x8x8xf32>
    %270 = arith.truncf %269 : vector<2x8x8xf32> to vector<2x8x8xbf16>
    %271 = vector.extract_strided_slice %224 {offsets = [0, 0, 80], sizes = [2, 8, 8], strides = [1, 1, 1]} : vector<2x8x96xf32> to vector<2x8x8xf32>
    %272 = arith.truncf %271 : vector<2x8x8xf32> to vector<2x8x8xbf16>
    "tpu.trace_start"() <{level = 10 : i32, message = "bqd,bkd->bqk"}> : () -> ()
    %cst_98 = arith.constant dense<0.000000e+00> : vector<2x8x8xf32>
    %273 = tpu.matmul %268, %270, %cst_98 {dimension_numbers = #tpu.dot_dimension_numbers<[2], [2], [1], [1], [0, 0, 0, 1, 1, 1], [0], [0]>} : vector<2x8x8xbf16>, vector<2x8x8xbf16>, vector<2x8x8xf32> -> vector<2x8x8xf32>
    "tpu.trace_stop"() : () -> ()
    %274 = vector.broadcast %1 : vector<2x1x8xf32> to vector<2x8x8xf32>
    %275 = arith.addf %273, %274 : vector<2x8x8xf32>
    %cst_99 = arith.constant dense<0xFF800000> : vector<2x8xf32>
    %276 = vector.multi_reduction <maximumf>, %275, %cst_99 [2] : vector<2x8x8xf32> to vector<2x8xf32>
    %277 = vector.shape_cast %276 : vector<2x8xf32> to vector<2x8x1xf32>
    %278 = vector.broadcast %277 : vector<2x8x1xf32> to vector<2x8x8xf32>
    %279 = arith.subf %275, %278 : vector<2x8x8xf32>
    %280 = math.exp %279 : vector<2x8x8xf32>
    %cst_100 = arith.constant dense<0.000000e+00> : vector<2x8xf32>
    %281 = vector.multi_reduction <add>, %280, %cst_100 [2] : vector<2x8x8xf32> to vector<2x8xf32>
    %282 = vector.shape_cast %281 : vector<2x8xf32> to vector<2x8x1xf32>
    %283 = tpu.reciprocal %282 {approx = true} : vector<2x8x1xf32> -> vector<2x8x1xf32>
    %284 = vector.broadcast %283 : vector<2x8x1xf32> to vector<2x8x8xf32>
    %285 = arith.mulf %280, %284 : vector<2x8x8xf32>
    %286 = arith.truncf %285 : vector<2x8x8xf32> to vector<2x8x8xbf16>
    "tpu.trace_start"() <{level = 10 : i32, message = "bqk,bkd->bqd"}> : () -> ()
    %cst_101 = arith.constant dense<0.000000e+00> : vector<2x8x8xf32>
    %287 = tpu.matmul %286, %272, %cst_101 {dimension_numbers = #tpu.dot_dimension_numbers<[2], [1], [1], [2], [0, 0, 0, 1, 1, 2], [0], [0]>} : vector<2x8x8xbf16>, vector<2x8x8xbf16>, vector<2x8x8xf32> -> vector<2x8x8xf32>
    "tpu.trace_stop"() : () -> ()
    %288 = vector.extract_strided_slice %224 {offsets = [0, 0, 24], sizes = [2, 8, 8], strides = [1, 1, 1]} : vector<2x8x96xf32> to vector<2x8x8xf32>
    %289 = arith.truncf %288 : vector<2x8x8xf32> to vector<2x8x8xbf16>
    %290 = vector.extract_strided_slice %224 {offsets = [0, 0, 56], sizes = [2, 8, 8], strides = [1, 1, 1]} : vector<2x8x96xf32> to vector<2x8x8xf32>
    %291 = arith.truncf %290 : vector<2x8x8xf32> to vector<2x8x8xbf16>
    %292 = vector.extract_strided_slice %224 {offsets = [0, 0, 88], sizes = [2, 8, 8], strides = [1, 1, 1]} : vector<2x8x96xf32> to vector<2x8x8xf32>
    %293 = arith.truncf %292 : vector<2x8x8xf32> to vector<2x8x8xbf16>
    "tpu.trace_start"() <{level = 10 : i32, message = "bqd,bkd->bqk"}> : () -> ()
    %cst_102 = arith.constant dense<0.000000e+00> : vector<2x8x8xf32>
    %294 = tpu.matmul %289, %291, %cst_102 {dimension_numbers = #tpu.dot_dimension_numbers<[2], [2], [1], [1], [0, 0, 0, 1, 1, 1], [0], [0]>} : vector<2x8x8xbf16>, vector<2x8x8xbf16>, vector<2x8x8xf32> -> vector<2x8x8xf32>
    "tpu.trace_stop"() : () -> ()
    %295 = vector.broadcast %1 : vector<2x1x8xf32> to vector<2x8x8xf32>
    %296 = arith.addf %294, %295 : vector<2x8x8xf32>
    %cst_103 = arith.constant dense<0xFF800000> : vector<2x8xf32>
    %297 = vector.multi_reduction <maximumf>, %296, %cst_103 [2] : vector<2x8x8xf32> to vector<2x8xf32>
    %298 = vector.shape_cast %297 : vector<2x8xf32> to vector<2x8x1xf32>
    %299 = vector.broadcast %298 : vector<2x8x1xf32> to vector<2x8x8xf32>
    %300 = arith.subf %296, %299 : vector<2x8x8xf32>
    %301 = math.exp %300 : vector<2x8x8xf32>
    %cst_104 = arith.constant dense<0.000000e+00> : vector<2x8xf32>
    %302 = vector.multi_reduction <add>, %301, %cst_104 [2] : vector<2x8x8xf32> to vector<2x8xf32>
    %303 = vector.shape_cast %302 : vector<2x8xf32> to vector<2x8x1xf32>
    %304 = tpu.reciprocal %303 {approx = true} : vector<2x8x1xf32> -> vector<2x8x1xf32>
    %305 = vector.broadcast %304 : vector<2x8x1xf32> to vector<2x8x8xf32>
    %306 = arith.mulf %301, %305 : vector<2x8x8xf32>
    %307 = arith.truncf %306 : vector<2x8x8xf32> to vector<2x8x8xbf16>
    "tpu.trace_start"() <{level = 10 : i32, message = "bqk,bkd->bqd"}> : () -> ()
    %cst_105 = arith.constant dense<0.000000e+00> : vector<2x8x8xf32>
    %308 = tpu.matmul %307, %293, %cst_105 {dimension_numbers = #tpu.dot_dimension_numbers<[2], [1], [1], [2], [0, 0, 0, 1, 1, 2], [0], [0]>} : vector<2x8x8xbf16>, vector<2x8x8xbf16>, vector<2x8x8xf32> -> vector<2x8x8xf32>
    "tpu.trace_stop"() : () -> ()
    %309 = tpu.concatenate %245, %266, %287, %308 in 2 : vector<2x8x8xf32>, vector<2x8x8xf32>, vector<2x8x8xf32>, vector<2x8x8xf32> -> vector<2x8x32xf32>
    %310 = vector.shape_cast %309 : vector<2x8x32xf32> to vector<16x32xf32>
    %311 = arith.truncf %310 : vector<16x32xf32> to vector<16x32xbf16>
    %c1_106 = arith.constant 1 : index
    %c0_107 = arith.constant 0 : index
    %c0_108 = arith.constant 0 : index
    %312 = vector.load %arg6[%c1_106, %c0_107, %c0_108] : memref<2x32x32xbf16, #tpu.memory_space<vmem>>, vector<1x32x32xbf16>
    %313 = vector.shape_cast %312 : vector<1x32x32xbf16> to vector<32x32xbf16>
    %cst_109 = arith.constant dense<0.000000e+00> : vector<16x32xf32>
    %314 = tpu.matmul %311, %313, %cst_109 {dimension_numbers = #tpu.dot_dimension_numbers<[1], [0], [0], [1], [0, 0, 1, 1], [], []>} : vector<16x32xbf16>, vector<32x32xbf16>, vector<16x32xf32> -> vector<16x32xf32>
    %c1_110 = arith.constant 1 : index
    %c0_111 = arith.constant 0 : index
    %c0_112 = arith.constant 0 : index
    %315 = vector.load %arg7[%c1_110, %c0_111, %c0_112] : memref<2x1x32xf32, #tpu.memory_space<vmem>>, vector<1x1x32xf32>
    %316 = vector.shape_cast %315 : vector<1x1x32xf32> to vector<1x32xf32>
    %317 = vector.broadcast %316 : vector<1x32xf32> to vector<16x32xf32>
    %318 = arith.addf %314, %317 : vector<16x32xf32>
    %319 = arith.addf %318, %212 : vector<16x32xf32>
    %c1_113 = arith.constant 1 : index
    %c0_114 = arith.constant 0 : index
    %c0_115 = arith.constant 0 : index
    %320 = vector.load %arg8[%c1_113, %c0_114, %c0_115] : memref<2x1x32xf32, #tpu.memory_space<vmem>>, vector<1x1x32xf32>
    %321 = vector.shape_cast %320 : vector<1x1x32xf32> to vector<1x32xf32>
    %c1_116 = arith.constant 1 : index
    %c0_117 = arith.constant 0 : index
    %c0_118 = arith.constant 0 : index
    %322 = vector.load %arg9[%c1_116, %c0_117, %c0_118] : memref<2x1x32xf32, #tpu.memory_space<vmem>>, vector<1x1x32xf32>
    %323 = vector.shape_cast %322 : vector<1x1x32xf32> to vector<1x32xf32>
    %cst_119 = arith.constant dense<0.000000e+00> : vector<16xf32>
    %324 = vector.multi_reduction <add>, %319, %cst_119 [1] : vector<16x32xf32> to vector<16xf32>
    %325 = vector.shape_cast %324 : vector<16xf32> to vector<16x1xf32>
    %cst_120 = arith.constant 3.200000e+01 : f32
    %326 = vector.broadcast %cst_120 : f32 to vector<16x1xf32>
    %327 = arith.divf %325, %326 : vector<16x1xf32>
    %328 = vector.broadcast %327 : vector<16x1xf32> to vector<16x32xf32>
    %329 = arith.subf %319, %328 : vector<16x32xf32>
    %330 = arith.mulf %329, %329 : vector<16x32xf32>
    %cst_121 = arith.constant dense<0.000000e+00> : vector<16xf32>
    %331 = vector.multi_reduction <add>, %330, %cst_121 [1] : vector<16x32xf32> to vector<16xf32>
    %332 = vector.shape_cast %331 : vector<16xf32> to vector<16x1xf32>
    %cst_122 = arith.constant 3.200000e+01 : f32
    %333 = vector.broadcast %cst_122 : f32 to vector<16x1xf32>
    %334 = arith.divf %332, %333 : vector<16x1xf32>
    %335 = vector.broadcast %327 : vector<16x1xf32> to vector<16x32xf32>
    %336 = arith.subf %319, %335 : vector<16x32xf32>
    %cst_123 = arith.constant 9.99999996E-13 : f32
    %337 = vector.broadcast %cst_123 : f32 to vector<16x1xf32>
    %338 = arith.addf %334, %337 : vector<16x1xf32>
    %339 = math.rsqrt %338 : vector<16x1xf32>
    %340 = vector.broadcast %339 : vector<16x1xf32> to vector<16x32xf32>
    %341 = arith.mulf %336, %340 : vector<16x32xf32>
    %342 = vector.broadcast %321 : vector<1x32xf32> to vector<16x32xf32>
    %343 = arith.mulf %341, %342 : vector<16x32xf32>
    %344 = vector.broadcast %323 : vector<1x32xf32> to vector<16x32xf32>
    %345 = arith.addf %343, %344 : vector<16x32xf32>
    %346 = arith.truncf %345 : vector<16x32xf32> to vector<16x32xbf16>
    %c1_124 = arith.constant 1 : index
    %c0_125 = arith.constant 0 : index
    %c0_126 = arith.constant 0 : index
    %347 = vector.load %arg10[%c1_124, %c0_125, %c0_126] : memref<2x32x64xbf16, #tpu.memory_space<vmem>>, vector<1x32x64xbf16>
    %348 = vector.shape_cast %347 : vector<1x32x64xbf16> to vector<32x64xbf16>
    %cst_127 = arith.constant dense<0.000000e+00> : vector<16x64xf32>
    %349 = tpu.matmul %346, %348, %cst_127 {dimension_numbers = #tpu.dot_dimension_numbers<[1], [0], [0], [1], [0, 0, 1, 1], [], []>} : vector<16x32xbf16>, vector<32x64xbf16>, vector<16x64xf32> -> vector<16x64xf32>
    %c1_128 = arith.constant 1 : index
    %c0_129 = arith.constant 0 : index
    %c0_130 = arith.constant 0 : index
    %350 = vector.load %arg11[%c1_128, %c0_129, %c0_130] : memref<2x1x64xf32, #tpu.memory_space<vmem>>, vector<1x1x64xf32>
    %351 = vector.shape_cast %350 : vector<1x1x64xf32> to vector<1x64xf32>
    %352 = vector.broadcast %351 : vector<1x64xf32> to vector<16x64xf32>
    %353 = arith.addf %349, %352 : vector<16x64xf32>
    %cst_131 = arith.constant 5.000000e-01 : f32
    %354 = vector.broadcast %cst_131 : f32 to vector<16x64xf32>
    %355 = arith.mulf %354, %353 : vector<16x64xf32>
    %cst_132 = arith.constant 4.471500e-02 : f32
    %356 = vector.broadcast %cst_132 : f32 to vector<16x64xf32>
    %357 = arith.mulf %356, %353 : vector<16x64xf32>
    %358 = arith.mulf %357, %353 : vector<16x64xf32>
    %359 = arith.mulf %358, %353 : vector<16x64xf32>
    %360 = arith.addf %353, %359 : vector<16x64xf32>
    %cst_133 = arith.constant 0.797884583 : f32
    %361 = vector.broadcast %cst_133 : f32 to vector<16x64xf32>
    %362 = arith.mulf %361, %360 : vector<16x64xf32>
    %363 = math.tanh %362 : vector<16x64xf32>
    %cst_134 = arith.constant 1.000000e+00 : f32
    %364 = vector.broadcast %cst_134 : f32 to vector<16x64xf32>
    %365 = arith.addf %364, %363 : vector<16x64xf32>
    %366 = arith.mulf %355, %365 : vector<16x64xf32>
    %367 = arith.truncf %366 : vector<16x64xf32> to vector<16x64xbf16>
    %c1_135 = arith.constant 1 : index
    %c0_136 = arith.constant 0 : index
    %c0_137 = arith.constant 0 : index
    %368 = vector.load %arg12[%c1_135, %c0_136, %c0_137] : memref<2x64x32xbf16, #tpu.memory_space<vmem>>, vector<1x64x32xbf16>
    %369 = vector.shape_cast %368 : vector<1x64x32xbf16> to vector<64x32xbf16>
    %cst_138 = arith.constant dense<0.000000e+00> : vector<16x32xf32>
    %370 = tpu.matmul %367, %369, %cst_138 {dimension_numbers = #tpu.dot_dimension_numbers<[1], [0], [0], [1], [0, 0, 1, 1], [], []>} : vector<16x64xbf16>, vector<64x32xbf16>, vector<16x32xf32> -> vector<16x32xf32>
    %c1_139 = arith.constant 1 : index
    %c0_140 = arith.constant 0 : index
    %c0_141 = arith.constant 0 : index
    %371 = vector.load %arg13[%c1_139, %c0_140, %c0_141] : memref<2x1x32xf32, #tpu.memory_space<vmem>>, vector<1x1x32xf32>
    %372 = vector.shape_cast %371 : vector<1x1x32xf32> to vector<1x32xf32>
    %373 = vector.broadcast %372 : vector<1x32xf32> to vector<16x32xf32>
    %374 = arith.addf %370, %373 : vector<16x32xf32>
    %375 = arith.addf %374, %345 : vector<16x32xf32>
    %c1_142 = arith.constant 1 : index
    %c0_143 = arith.constant 0 : index
    %c0_144 = arith.constant 0 : index
    %376 = vector.load %arg14[%c1_142, %c0_143, %c0_144] : memref<2x1x32xf32, #tpu.memory_space<vmem>>, vector<1x1x32xf32>
    %377 = vector.shape_cast %376 : vector<1x1x32xf32> to vector<1x32xf32>
    %c1_145 = arith.constant 1 : index
    %c0_146 = arith.constant 0 : index
    %c0_147 = arith.constant 0 : index
    %378 = vector.load %arg15[%c1_145, %c0_146, %c0_147] : memref<2x1x32xf32, #tpu.memory_space<vmem>>, vector<1x1x32xf32>
    %379 = vector.shape_cast %378 : vector<1x1x32xf32> to vector<1x32xf32>
    %cst_148 = arith.constant dense<0.000000e+00> : vector<16xf32>
    %380 = vector.multi_reduction <add>, %375, %cst_148 [1] : vector<16x32xf32> to vector<16xf32>
    %381 = vector.shape_cast %380 : vector<16xf32> to vector<16x1xf32>
    %cst_149 = arith.constant 3.200000e+01 : f32
    %382 = vector.broadcast %cst_149 : f32 to vector<16x1xf32>
    %383 = arith.divf %381, %382 : vector<16x1xf32>
    %384 = vector.broadcast %383 : vector<16x1xf32> to vector<16x32xf32>
    %385 = arith.subf %375, %384 : vector<16x32xf32>
    %386 = arith.mulf %385, %385 : vector<16x32xf32>
    %cst_150 = arith.constant dense<0.000000e+00> : vector<16xf32>
    %387 = vector.multi_reduction <add>, %386, %cst_150 [1] : vector<16x32xf32> to vector<16xf32>
    %388 = vector.shape_cast %387 : vector<16xf32> to vector<16x1xf32>
    %cst_151 = arith.constant 3.200000e+01 : f32
    %389 = vector.broadcast %cst_151 : f32 to vector<16x1xf32>
    %390 = arith.divf %388, %389 : vector<16x1xf32>
    %391 = vector.broadcast %383 : vector<16x1xf32> to vector<16x32xf32>
    %392 = arith.subf %375, %391 : vector<16x32xf32>
    %cst_152 = arith.constant 9.99999996E-13 : f32
    %393 = vector.broadcast %cst_152 : f32 to vector<16x1xf32>
    %394 = arith.addf %390, %393 : vector<16x1xf32>
    %395 = math.rsqrt %394 : vector<16x1xf32>
    %396 = vector.broadcast %395 : vector<16x1xf32> to vector<16x32xf32>
    %397 = arith.mulf %392, %396 : vector<16x32xf32>
    %398 = vector.broadcast %377 : vector<1x32xf32> to vector<16x32xf32>
    %399 = arith.mulf %397, %398 : vector<16x32xf32>
    %400 = vector.broadcast %379 : vector<1x32xf32> to vector<16x32xf32>
    %401 = arith.addf %399, %400 : vector<16x32xf32>
    %c1_153 = arith.constant 1 : index
    %c0_154 = arith.constant 0 : index
    %c0_155 = arith.constant 0 : index
    %402 = vector.load %arg18[%c1_153, %c0_154, %c0_155] : memref<2x16x32xf32, #tpu.memory_space<vmem>>, vector<1x16x32xf32>
    %403 = vector.shape_cast %402 : vector<1x16x32xf32> to vector<16x32xf32>
    %404 = vector.shape_cast %401 : vector<16x32xf32> to vector<1x16x32xf32>
    tpu.vector_store %arg18[%c1_153, %c0_154, %c0_155], %404 {strides = array<i32>} : memref<2x16x32xf32, #tpu.memory_space<vmem>>, vector<1x16x32xf32>,
    %405 = vector.shape_cast %401 : vector<16x32xf32> to vector<2x8x32xf32>
    %406 = vector.extract_strided_slice %405 {offsets = [0, 0, 0], sizes = [2, 1, 32], strides = [1, 1, 1]} : vector<2x8x32xf32> to vector<2x1x32xf32>
    %407 = vector.shape_cast %406 : vector<2x1x32xf32> to vector<2x32xf32>
    %408 = arith.truncf %407 : vector<2x32xf32> to vector<2x32xbf16>
    %c0_156 = arith.constant 0 : index
    %c0_157 = arith.constant 0 : index
    %409 = vector.load %arg16[%c0_156, %c0_157] : memref<32x32xbf16, #tpu.memory_space<vmem>>, vector<32x32xbf16>
    %cst_158 = arith.constant dense<0.000000e+00> : vector<2x32xf32>
    %410 = tpu.matmul %408, %409, %cst_158 {dimension_numbers = #tpu.dot_dimension_numbers<[1], [0], [0], [1], [0, 0, 1, 1], [], []>} : vector<2x32xbf16>, vector<32x32xbf16>, vector<2x32xf32> -> vector<2x32xf32>
    %c0_159 = arith.constant 0 : index
    %c0_160 = arith.constant 0 : index
    %411 = vector.load %arg17[%c0_159, %c0_160] : memref<1x32xf32, #tpu.memory_space<vmem>>, vector<1x32xf32>
    %412 = vector.broadcast %411 : vector<1x32xf32> to vector<2x32xf32>
    %413 = arith.addf %410, %412 : vector<2x32xf32>
    %414 = math.tanh %413 : vector<2x32xf32>
    %c0_161 = arith.constant 0 : index
    %c0_162 = arith.constant 0 : index
    %415 = vector.load %arg19[%c0_161, %c0_162] : memref<2x32xf32, #tpu.memory_space<vmem>>, vector<2x32xf32>
    tpu.vector_store %arg19[%c0_161, %c0_162], %414 {strides = array<i32>} : memref<2x32xf32, #tpu.memory_space<vmem>>, vector<2x32xf32>,
    return
  }
}

</mosaic_0001>

<bundles_post_ra>
// kernel: bert_forward.1
= control target key start
LH: loop header
LB: loop body
LE: loop exit
PB: predicated region body
PF: predicated region fallthrough
CT: control target
= control target key end

     0   :  { %s4273_s0 = inlined_call_operand.vmem [shape: f32[16,32], index: 0, kind: input, shape index: {}]   ;;  %s4274_s1 = inlined_call_operand.vmem [shape: f32[2,8], index: 1, kind: input, shape index: {}]   ;;  %s4275_s2 = inlined_call_operand.vmem [shape: f32[1,32], index: 2, kind: input, shape index: {}]   ;;  %s4276_s3 = inlined_call_operand.vmem [shape: f32[1,32], index: 3, kind: input, shape index: {}]   ;;  %s4277_s4 = inlined_call_operand.vmem [shape: bf16[2,32,96], index: 4, kind: input, shape index: {}]   ;;  %s4278_s5 = inlined_call_operand.vmem [shape: f32[2,1,96], index: 5, kind: input, shape index: {}]   ;;  %s4279_s6 = inlined_call_operand.vmem [shape: bf16[2,32,32], index: 6, kind: input, shape index: {}]   ;;  %s4280_s7 = inlined_call_operand.vmem [shape: f32[2,1,32], index: 7, kind: input, shape index: {}]   ;;  %s4281_s8 = inlined_call_operand.vmem [shape: f32[2,1,32], index: 8, kind: input, shape index: {}]   ;;  %s4282_s9 = inlined_call_operand.vmem [shape: f32[2,1,32], index: 9, kind: input, shape index: {}]   ;;  %s4283_s10 = inlined_call_operand.vmem [shape: bf16[2,32,64], index: 10, kind: input, shape index: {}]   ;;  %s4284_s11 = inlined_call_operand.vmem [shape: f32[2,1,64], index: 11, kind: input, shape index: {}]   ;;  %s4285_s12 = inlined_call_operand.vmem [shape: bf16[2,64,32], index: 12, kind: input, shape index: {}]   ;;  %s4286_s13 = inlined_call_operand.vmem [shape: f32[2,1,32], index: 13, kind: input, shape index: {}]   ;;  %s4287_s14 = inlined_call_operand.vmem [shape: f32[2,1,32], index: 14, kind: input, shape index: {}]   ;;  %s4288_s15 = inlined_call_operand.vmem [shape: f32[2,1,32], index: 15, kind: input, shape index: {}]   ;;  %s4289_s16 = inlined_call_operand.vmem [shape: bf16[32,32], index: 16, kind: input, shape index: {}]   ;;  %s4290_s17 = inlined_call_operand.vmem [shape: f32[1,32], index: 17, kind: input, shape index: {}]   ;;  %s4291_s18 = inlined_call_operand.vmem [shape: f32[2,16,32], index: 18, kind: output, shape index: {0}]   ;;  %s4292_s19 = inlined_call_operand.hbm [shape: f32[2,32], index: 19, kind: output, shape index: {1}]  }
   0x1   :  { %4305 = sst [smem:[#allocation5_spill]] %s4273_s0 }
   0x2   :  { %4306 = sst [smem:[#allocation6_spill]] %s4274_s1 }
   0x3   :  { %4307 = sst [smem:[#allocation7_spill]] %s4275_s2 }
   0x4   :  { %4308 = sst [smem:[#allocation8_spill]] %s4276_s3 }
   0x5   :  { %s4309_s20 = sld [smem:[#allocation5_spill]]  ;;  %vm91_vm0 = vcmask 261120  }
   0xb   :  { %v87_v0 = vld [vmem:[%s4309_s20] sm:$0xff]  ;;  %v88_v1 = vld [vmem:[%s4309_s20 + $0x8] sm:$0xff] }
   0xc   :  { %v92_v2 = vsel %vm91_vm0, %v87_v0, 0.0  ;;  %v95_v3 = vsel %vm91_vm0, %v88_v1, 0.0 }
   0xd   :  { %93 = vadd.xlane.f32.xlu0 %v92_v2 }
  0x11   :  { %96 = vadd.xlane.f32.xlu0 %v95_v3 }
  0x12   :  { %25 = vsyncpa [#allocation3], 0  ;;  %v3408_v14 = vld [vmem:[%s4277_s4] sm:$0xff]   ;;  %v3548_v15 = vmov 0.0   ;;  %vm3549_vm1 = vmmov 0   ;;  %v3409_v16 = vld [vmem:[%s4277_s4 + $0x8] sm:$0xff]   ;;  %v76_v49 = vlaneseq }
  0x13   :  { %3088 = vmatprep.subr.bf16.mxu0 %v3548_v15  ;;  %3092 = vmatprep.mubr.msk.bf16.mxu0 %vm3549_vm1, %v3548_v15  ;;  %s4310_s26 = sld [smem:[#allocation7_spill]]  ;;  %s4311_s29 = sld [smem:[#allocation8_spill]]  ;;  %v2883_v34 = vld [vmem:[%s4278_s5] ss:$0 sm:$0xff]  ;;  %vm218_vm2 = vcmask 64512   ;;  %vm343_vm3 = vcmask 1043456  }
  0x14   :  { %3089 = vmatpush3.bf16.msra.mxu0 %v3408_v14  ;;  %3096 = vmatprep.subr.bf16.mxu1 %v3548_v15  ;;  %s3550_s20 = smov 96   ;;  %v3551_v47 = vmov 1966171168   ;;  %v77_v51 = vshrl.u32 %v76_v49, 7  ;;  %s4312_s22 = sld [smem:[#allocation6_spill]]  ;;  %vm1121_vm4 = vcmask 130048  }
  0x15   :  { %3090 = vmatprep.subr.bf16.mxu0 %v3548_v15  ;;  %3098 = vmatprep.mubr.msk.bf16.mxu1 %vm3549_vm1, %v3548_v15  ;;  %v74_v48 = vunpack.c.l.s4 %v3551_v47  ;;  %s3552_s2 = smov 64   ;;  %s3553_s23 = smov 88   ;;  %vm1124_vm5 = vcmask 195584   ;;  %vm1367_vm6 = vcmask 523264   ;;  %vm2801_vm7 = vcmask 1041409  }
  0x16   :  { %v207_v56 = vsub.s32 0, %v77_v51  ;;  %s3554_s24 = smov 120   ;;  %s3555_s25 = smov 56   ;;  %vm2860_vm8 = vcmask 254976  }
  0x17   :  { %v75_v50 = vunpack.c.0.s8 %v74_v48  ;;  %s3556_s3 = smov 80   ;;  %s4303_s27 = smov 48  }
  0x18   :  { %3091 = vmatpush3.bf16.msra.mxu0 %v3409_v16  ;;  %s4301_s28 = smov 72   ;;  %s4297_s0 = smov 40  }
  0x19   :  { %3102 = vmatprep.subr.bf16.mxu0 %v3548_v15  ;;  %v2881_v25 = vld [vmem:[%s4310_s26] ss:$0 sm:$0xff]  ;;  %v78_v53 = vsub.s32 %v75_v50, %v77_v51  ;;  %s3557_s26 = smov 112   ;;  %s4295_s30 = smov 8  }
  0x1a   :  { %v2882_v29 = vld [vmem:[%s4311_s29] ss:$0 sm:$0xff]  ;;  %s4299_s29 = smov 104   ;;  %s4294_s21 = smov 16  }
  0x1b   :  { %v2880_v52 = vld.sshfl [vmem:[%s4312_s22] sm:$0x11 pattern:$0x75316420]  ;;  %s4296_s1 = smov 24  }
  0x1c   :  { %v72_v54 = vcombine.high %v2880_v52, %v2880_v52  ;;  %v79_v55 = vrot.slane %v2880_v52, %v78_v53 }
  0x1e   :  { %v86_v57 = vrot.slane %v72_v54, %v78_v53  ;;  %v3731_v58 = vrot.slane %v79_v55, %v207_v56 }
  0x20   :  { %v3733_v59 = vrot.slane %v86_v57, %v207_v56 }
  0x9a   :  { %v94_v4 = vpop.xlane.xlu0 %93 }
  0x9b   :  { %v99_v5 = vmul.f32 0.03125, %v94_v4 }
  0x9d   :  { %v101_v6 = vsub.f32 %v87_v0, %v99_v5 }
  0x9e   :  { %v97_v7 = vpop.xlane.xlu0 %96 }
  0x9f   :  { %v100_v8 = vmul.f32 0.03125, %v97_v7  ;;  %v103_v9 = vmul.f32 %v101_v6, %v101_v6 }
  0xa1   :  { %v102_v10 = vsub.f32 %v88_v1, %v100_v8  ;;  %v105_v11 = vsel %vm91_vm0, %v103_v9, 0.0 }
  0xa2   :  { %106 = vadd.xlane.f32.xlu1 %v105_v11 }
  0xa3   :  { %v104_v12 = vmul.f32 %v102_v10, %v102_v10 }
  0xa5   :  { %v108_v13 = vsel %vm91_vm0, %v104_v12, 0.0 }
  0xa6   :  { %109 = vadd.xlane.f32.xlu1 %v108_v13 }
 0x12f   :  { %v107_v17 = vpop.xlane.xlu1 %106 }
 0x130   :  { %v111_v18 = vmul.f32 0.03125, %v107_v17 }
 0x132   :  { %v113_v19 = vadd.f32 1e-12, %v111_v18 }
 0x133   :  { %v110_v20 = vpop.xlane.xlu1 %109 }
 0x134   :  { %3430 = vrsqrt.f32 %v113_v19  ;;  %v112_v21 = vmul.f32 0.03125, %v110_v20 }
 0x136   :  { %v114_v22 = vadd.f32 1e-12, %v112_v21 }
 0x138   :  { %3432 = vrsqrt.f32 %v114_v22 }
 0x13e   :  { %v3431_v23 = vpop.eup %3430 }
 0x13f   :  { %v117_v24 = vmul.f32 %v3431_v23, %v101_v6 }
 0x141   :  { %v125_v28 = vmul.f32 %v2881_v25, %v117_v24 }
 0x142   :  { %v3433_v26 = vpop.eup %3432 }
 0x143   :  { %v118_v27 = vmul.f32 %v3433_v26, %v102_v10  ;;  %v3696_v31 = vadd.f32 %v2882_v29, %v125_v28 }
 0x145   :  { %v126_v30 = vmul.f32 %v2881_v25, %v118_v27 }
 0x147   :  { %v3698_v32 = vadd.f32 %v2882_v29, %v126_v30 }
 0x149   :  { %v135_v33 = vpack.c.bf16 %v3698_v32, %v3696_v31 }
 0x14b   :  { %3093 = vmatmul.mubr.msk.bf16.vlgmr.msra.gmra.mrb[0].mxu0 %vm91_vm0, %v135_v33 }
 0x14c   :  { %3104 = vmatprep.mubr.msk.bf16.mxu0 %vm3549_vm1, %v3548_v15 }
 0x21e   :  { %v196_v35 = vpop.f32.mrb[0].mxu0 }
 0x21f   :  { %v197_v36 = vadd.f32 %v2883_v34, %v196_v35  ;;  %v3094_v37 = vpop.f32.mrb[1].mxu0 }
 0x220   :  { %v199_v38 = vpop.f32.mrb[2].mxu0 }
 0x221   :  { %v3708_v39 = vpack.c.bf16 %v197_v36, %v197_v36  ;;  %v200_v40 = vadd.f32 %v2883_v34, %v199_v38  ;;  %v3095_v41 = vpop.f32.mrb[3].mxu0 }
 0x223   :  { %v3710_v42 = vpack.c.bf16 %v200_v40, %v200_v40  ;;  %216 = vrot.lane.b32.xlu0 %v3708_v39, %s3550_s20 }
 0x225   :  { %266 = vrot.lane.b32.xlu1 %v3710_v42, %s3550_s20 }
 0x295   :  { %v217_v43 = vpop.permute.xlu0 %216 }
 0x296   :  { %v223_v44 = vsel %vm218_vm2, %v217_v43, 0 }
 0x297   :  { %3097 = vmatpush3.bf16.xpose.msra.mxu1 %v223_v44  ;;  %v267_v45 = vpop.permute.xlu1 %266 }
 0x298   :  { %v272_v46 = vsel %vm218_vm2, %v267_v45, 0  ;;  %3108 = vmatprep.subr.bf16.mxu1 %v3548_v15 }
 0x299   :  { %3103 = vmatpush3.bf16.xpose.msra.mxu0 %v272_v46 }
 0x29a   :  { %3114 = vmatprep.subr.bf16.mxu0 %v3548_v15 }
 0x29e   :  { %3099 = vmatmul.mubr.msk.bf16.vlgmr.msra.gmra.mrb[0].mxu1 %vm218_vm2, %v3708_v39 }
 0x29f   :  { %3110 = vmatprep.mubr.msk.bf16.mxu1 %vm3549_vm1, %v3548_v15 }
 0x2a0   :  { %3105 = vmatmul.mubr.msk.bf16.vlgmr.msra.gmra.mrb[4].mxu0 %vm218_vm2, %v3710_v42 }
 0x2a1   :  { %3116 = vmatprep.mubr.msk.bf16.mxu0 %vm3549_vm1, %v3548_v15 }
 0x371   :  { %v259_v60 = vpop.f32.mrb[0].mxu1 }
 0x372   :  { %v260_v61 = vadd.f32 %v259_v60, %v3731_v58  ;;  %v3100_v62 = vpop.f32.mrb[1].mxu1 }
 0x373   :  { %v262_v63 = vpop.f32.mrb[2].mxu1  ;;  %v308_v0 = vpop.f32.mrb[4].mxu0 }
 0x374   :  { %v309_v1 = vadd.f32 %v308_v0, %v3733_v59  ;;  %v3101_v2 = vpop.f32.mrb[3].mxu1  ;;  %v3106_v3 = vpop.f32.mrb[5].mxu0  ;;  %v314_v4 = vsel %vm218_vm2, %v260_v61, -inf }
 0x375   :  { %v311_v5 = vpop.f32.mrb[6].mxu0  ;;  %315 = vmax.xlane.f32.xlu1 %v314_v4 }
 0x376   :  { %v3107_v6 = vpop.f32.mrb[7].mxu0  ;;  %v317_v7 = vsel %vm218_vm2, %v309_v1, -inf }
 0x377   :  { %318 = vmax.xlane.f32.xlu0 %v317_v7 }
 0x386   :  { %387 = vrot.lane.b32.xlu1 %v3710_v42, %s3552_s2 }
 0x38a   :  { %437 = vrot.lane.b32.xlu1 %v3708_v39, %s3553_s23 }
 0x402   :  { %v316_v8 = vpop.xlane.xlu1 %315 }
 0x403   :  { %v320_v9 = vsub.f32 %v260_v61, %v316_v8 }
 0x404   :  { %v319_v10 = vpop.xlane.xlu0 %318 }
 0x405   :  { %v322_v11 = vmul.f32 1.442695, %v320_v9  ;;  %v321_v12 = vsub.f32 %v309_v1, %v319_v10 }
 0x406   :  { %v388_v13 = vpop.permute.xlu1 %387 }
 0x407   :  { %3434 = vpow2.f32 %v322_v11  ;;  %v324_v14 = vmul.f32 1.442695, %v321_v12  ;;  %v393_v16 = vsel %vm343_vm3, %v388_v13, 0 }
 0x408   :  { %3115 = vmatpush3.bf16.msra.mxu0 %v393_v16 }
 0x409   :  { %3436 = vpow2.f32 %v324_v14  ;;  %3126 = vmatprep.subr.bf16.mxu0 %v3548_v15 }
 0x40a   :  { %v438_v21 = vpop.permute.xlu1 %437 }
 0x40b   :  { %v443_v34 = vsel %vm218_vm2, %v438_v21, 0 }
 0x411   :  { %v3435_v17 = vpop.eup %3434 }
 0x412   :  { %v326_v18 = vsel %vm218_vm2, %v3435_v17, 0.0 }
 0x413   :  { %v3437_v19 = vpop.eup %3436  ;;  %327 = vadd.xlane.f32.xlu0 %v326_v18 }
 0x414   :  { %v329_v20 = vsel %vm218_vm2, %v3437_v19, 0.0 }
 0x415   :  { %330 = vadd.xlane.f32.xlu1 %v329_v20 }
 0x426   :  { %487 = vrot.lane.b32.xlu1 %v3710_v42, %s3553_s23 }
 0x429   :  { %338 = vrot.lane.b32.xlu0 %v3708_v39, %s3552_s2 }
 0x42a   :  { %485 = vrot.lane.b32.xlu1 %v3710_v42, %s3554_s24 }
 0x42d   :  { %435 = vrot.lane.b32.xlu0 %v3708_v39, %s3554_s24 }
 0x4a0   :  { %v328_v22 = vpop.xlane.xlu0 %327 }
 0x4a1   :  { %3438 = vrcp.f32 %v328_v22 }
 0x4a2   :  { %v331_v23 = vpop.xlane.xlu1 %330 }
 0x4a3   :  { %3440 = vrcp.f32 %v331_v23 }
 0x4a4   :  { %v339_v24 = vpop.permute.xlu0 %338 }
 0x4a5   :  { %v345_v25 = vsel %vm343_vm3, %v339_v24, 0 }
 0x4a6   :  { %3109 = vmatpush3.bf16.msra.mxu1 %v345_v25  ;;  %v488_v33 = vpop.permute.xlu1 %487 }
 0x4a7   :  { %3120 = vmatprep.subr.bf16.mxu1 %v3548_v15  ;;  %v493_v36 = vsel %vm218_vm2, %v488_v33, 0 }
 0x4a8   :  { %v436_v37 = vpop.permute.xlu0 %435 }
 0x4aa   :  { %v486_v38 = vpop.permute.xlu1 %485 }
 0x4ab   :  { %v3439_v26 = vpop.eup %3438 }
 0x4ac   :  { %v334_v27 = vmul.f32 %v3439_v26, %v3435_v17 }
 0x4ad   :  { %v3441_v28 = vpop.eup %3440 }
 0x4ae   :  { %v335_v29 = vmul.f32 %v3441_v28, %v3437_v19  ;;  %v336_v30 = vpack.c.bf16 %v334_v27, %v334_v27 }
 0x4b0   :  { %3111 = vmatmul.mubr.msk.bf16.vlgmr.msra.gmra.mrb[4].mxu1 %vm218_vm2, %v336_v30  ;;  %v337_v35 = vpack.c.bf16 %v335_v29, %v335_v29 }
 0x4b1   :  { %3121 = vmatpush3.bf16.xpose.msra.mxu1 %v443_v34  ;;  %3122 = vmatprep.mubr.msk.bf16.mxu1 %vm3549_vm1, %v3548_v15 }
 0x4b2   :  { %3117 = vmatmul.mubr.msk.bf16.vlgmr.msra.gmra.mrb[8].mxu0 %vm218_vm2, %v337_v35  ;;  %3132 = vmatprep.subr.bf16.mxu1 %v3548_v15 }
 0x4b3   :  { %3127 = vmatpush3.bf16.xpose.msra.mxu0 %v493_v36  ;;  %3128 = vmatprep.mubr.msk.bf16.mxu0 %vm3549_vm1, %v3548_v15 }
 0x4b4   :  { %3138 = vmatprep.subr.bf16.mxu0 %v3548_v15 }
 0x4b8   :  { %3123 = vmatmul.mubr.msk.bf16.vlgmr.msra.gmra.mrb[8].mxu1 %vm218_vm2, %v436_v37 }
 0x4b9   :  { %3134 = vmatprep.mubr.msk.bf16.mxu1 %vm3549_vm1, %v3548_v15 }
 0x4ba   :  { %3129 = vmatmul.mubr.msk.bf16.vlgmr.msra.gmra.mrb[12].mxu0 %vm218_vm2, %v486_v38 }
 0x4bb   :  { %3140 = vmatprep.mubr.msk.bf16.mxu0 %vm3549_vm1, %v3548_v15 }
 0x583   :  { %v3773_v40 = vpop.f32.mrb[4].mxu1 }
 0x584   :  { %v3112_v41 = vpop.f32.mrb[5].mxu1 }
 0x585   :  { %v384_v43 = vpop.f32.mrb[6].mxu1  ;;  %v3775_v44 = vpop.f32.mrb[8].mxu0 }
 0x586   :  { %v3113_v45 = vpop.f32.mrb[7].mxu1  ;;  %v3118_v46 = vpop.f32.mrb[9].mxu0 }
 0x587   :  { %v432_v47 = vpop.f32.mrb[10].mxu0 }
 0x588   :  { %v3119_v48 = vpop.f32.mrb[11].mxu0 }
 0x58b   :  { %v479_v49 = vpop.f32.mrb[8].mxu1 }
 0x58c   :  { %v480_v50 = vadd.f32 %v479_v49, %v3731_v58  ;;  %v3124_v51 = vpop.f32.mrb[9].mxu1 }
 0x58d   :  { %v482_v52 = vpop.f32.mrb[10].mxu1  ;;  %v529_v53 = vpop.f32.mrb[12].mxu0 }
 0x58e   :  { %v530_v54 = vadd.f32 %v529_v53, %v3733_v59  ;;  %v3125_v55 = vpop.f32.mrb[11].mxu1  ;;  %v3130_v56 = vpop.f32.mrb[13].mxu0  ;;  %v535_v57 = vsel %vm218_vm2, %v480_v50, -inf }
 0x58f   :  { %v532_v60 = vpop.f32.mrb[14].mxu0  ;;  %536 = vmax.xlane.f32.xlu0 %v535_v57 }
 0x590   :  { %v3131_v61 = vpop.f32.mrb[15].mxu0  ;;  %v538_v62 = vsel %vm218_vm2, %v530_v54, -inf }
 0x591   :  { %539 = vmax.xlane.f32.xlu1 %v538_v62 }
 0x5a2   :  { %607 = vrot.lane.b32.xlu1 %v3710_v42, %s3555_s25 }
 0x5a6   :  { %657 = vrot.lane.b32.xlu1 %v3708_v39, %s3556_s3 }
 0x5aa   :  { %707 = vrot.lane.b32.xlu1 %v3710_v42, %s3556_s3 }
 0x5ae   :  { %705 = vrot.lane.b32.xlu1 %v3710_v42, %s3557_s26 }
 0x61c   :  { %v537_v63 = vpop.xlane.xlu0 %536 }
 0x61d   :  { %v541_v0 = vsub.f32 %v480_v50, %v537_v63 }
 0x61e   :  { %v540_v1 = vpop.xlane.xlu1 %539 }
 0x61f   :  { %v543_v2 = vmul.f32 1.442695, %v541_v0  ;;  %v542_v3 = vsub.f32 %v530_v54, %v540_v1 }
 0x621   :  { %3442 = vpow2.f32 %v543_v2  ;;  %v545_v4 = vmul.f32 1.442695, %v542_v3 }
 0x622   :  { %v608_v5 = vpop.permute.xlu1 %607 }
 0x623   :  { %3444 = vpow2.f32 %v545_v4  ;;  %v613_v6 = vsel %vm343_vm3, %v608_v5, 0 }
 0x624   :  { %3139 = vmatpush3.bf16.msra.mxu0 %v613_v6 }
 0x625   :  { %3150 = vmatprep.subr.bf16.mxu0 %v3548_v15 }
 0x626   :  { %v658_v17 = vpop.permute.xlu1 %657 }
 0x627   :  { %v663_v23 = vsel %vm218_vm2, %v658_v17, 0 }
 0x62a   :  { %v708_v22 = vpop.permute.xlu1 %707 }
 0x62b   :  { %v3443_v7 = vpop.eup %3442  ;;  %v713_v25 = vsel %vm218_vm2, %v708_v22, 0 }
 0x62c   :  { %v547_v8 = vsel %vm218_vm2, %v3443_v7, 0.0 }
 0x62d   :  { %v3445_v9 = vpop.eup %3444  ;;  %548 = vadd.xlane.f32.xlu0 %v547_v8 }
 0x62e   :  { %v550_v10 = vsel %vm218_vm2, %v3445_v9, 0.0  ;;  %v706_v27 = vpop.permute.xlu1 %705 }
 0x631   :  { %551 = vadd.xlane.f32.xlu0 %v550_v10 }
 0x647   :  { %559 = vrot.lane.b32.xlu0 %v3708_v39, %s3555_s25 }
 0x64b   :  { %655 = vrot.lane.b32.xlu0 %v3708_v39, %s3557_s26 }
 0x6ba   :  { %v549_v11 = vpop.xlane.xlu0 %548 }
 0x6bb   :  { %3446 = vrcp.f32 %v549_v11 }
 0x6be   :  { %v552_v12 = vpop.xlane.xlu0 %551 }
 0x6bf   :  { %3448 = vrcp.f32 %v552_v12 }
 0x6c2   :  { %v560_v13 = vpop.permute.xlu0 %559 }
 0x6c3   :  { %v565_v14 = vsel %vm343_vm3, %v560_v13, 0 }
 0x6c4   :  { %3133 = vmatpush3.bf16.msra.mxu1 %v565_v14 }
 0x6c5   :  { %v3447_v16 = vpop.eup %3446  ;;  %3144 = vmatprep.subr.bf16.mxu1 %v3548_v15 }
 0x6c6   :  { %v555_v18 = vmul.f32 %v3447_v16, %v3443_v7  ;;  %v656_v26 = vpop.permute.xlu0 %655 }
 0x6c8   :  { %v557_v19 = vpack.c.bf16 %v555_v18, %v555_v18 }
 0x6c9   :  { %v3449_v20 = vpop.eup %3448 }
 0x6ca   :  { %v556_v21 = vmul.f32 %v3449_v20, %v3445_v9  ;;  %3135 = vmatmul.mubr.msk.bf16.vlgmr.msra.gmra.mrb[12].mxu1 %vm218_vm2, %v557_v19 }
 0x6cb   :  { %3146 = vmatprep.mubr.msk.bf16.mxu1 %vm3549_vm1, %v3548_v15 }
 0x6cc   :  { %v558_v24 = vpack.c.bf16 %v556_v21, %v556_v21 }
 0x6cd   :  { %3145 = vmatpush3.bf16.xpose.msra.mxu1 %v663_v23 }
 0x6ce   :  { %3141 = vmatmul.mubr.msk.bf16.vlgmr.msra.gmra.mrb[16].mxu0 %vm218_vm2, %v558_v24  ;;  %3156 = vmatprep.subr.bf16.mxu1 %v3548_v15 }
 0x6cf   :  { %3151 = vmatpush3.bf16.xpose.msra.mxu0 %v713_v25  ;;  %3152 = vmatprep.mubr.msk.bf16.mxu0 %vm3549_vm1, %v3548_v15 }
 0x6d0   :  { %3162 = vmatprep.subr.bf16.mxu0 %v3548_v15 }
 0x6d4   :  { %3147 = vmatmul.mubr.msk.bf16.vlgmr.msra.gmra.mrb[16].mxu1 %vm218_vm2, %v656_v26 }
 0x6d5   :  { %3158 = vmatprep.mubr.msk.bf16.mxu1 %vm3549_vm1, %v3548_v15 }
 0x6d6   :  { %3153 = vmatmul.mubr.msk.bf16.vlgmr.msra.gmra.mrb[20].mxu0 %vm218_vm2, %v706_v27 }
 0x6d7   :  { %3164 = vmatprep.mubr.msk.bf16.mxu0 %vm3549_vm1, %v3548_v15 }
 0x79d   :  { %v3815_v28 = vpop.f32.mrb[12].mxu1 }
 0x79e   :  { %v3136_v29 = vpop.f32.mrb[13].mxu1 }
 0x79f   :  { %v604_v30 = vpop.f32.mrb[14].mxu1 }
 0x7a0   :  { %v3137_v33 = vpop.f32.mrb[15].mxu1 }
 0x7a1   :  { %v3817_v34 = vpop.f32.mrb[16].mxu0 }
 0x7a2   :  { %v3378_v35 = vpack.i.bf16 %v3817_v34, %v3815_v28  ;;  %v3142_v36 = vpop.f32.mrb[17].mxu0 }
 0x7a3   :  { %v652_v37 = vpop.f32.mrb[18].mxu0 }
 0x7a4   :  { %v3143_v38 = vpop.f32.mrb[19].mxu0 }
 0x7a7   :  { %v699_v41 = vpop.f32.mrb[16].mxu1 }
 0x7a8   :  { %v700_v43 = vadd.f32 %v699_v41, %v3731_v58  ;;  %v3148_v45 = vpop.f32.mrb[17].mxu1 }
 0x7a9   :  { %v702_v46 = vpop.f32.mrb[18].mxu1  ;;  %v749_v47 = vpop.f32.mrb[20].mxu0 }
 0x7aa   :  { %v750_v48 = vadd.f32 %v749_v47, %v3733_v59  ;;  %v3149_v49 = vpop.f32.mrb[19].mxu1  ;;  %v3154_v50 = vpop.f32.mrb[21].mxu0  ;;  %v755_v51 = vsel %vm218_vm2, %v700_v43, -inf }
 0x7ab   :  { %v752_v52 = vpop.f32.mrb[22].mxu0  ;;  %756 = vmax.xlane.f32.xlu0 %v755_v51 }
 0x7ac   :  { %v3155_v53 = vpop.f32.mrb[23].mxu0  ;;  %v758_v54 = vsel %vm218_vm2, %v750_v48, -inf }
 0x7ad   :  { %759 = vmax.xlane.f32.xlu1 %v758_v54 }
 0x7be   :  { %827 = vrot.lane.b32.xlu1 %v3710_v42, %s4303_s27 }
 0x7c2   :  { %877 = vrot.lane.b32.xlu1 %v3708_v39, %s4301_s28 }
 0x7c6   :  { %927 = vrot.lane.b32.xlu1 %v3710_v42, %s4301_s28 }
 0x7ca   :  { %925 = vrot.lane.b32.xlu1 %v3710_v42, %s4299_s29 }
 0x838   :  { %v757_v55 = vpop.xlane.xlu0 %756 }
 0x839   :  { %v761_v56 = vsub.f32 %v700_v43, %v757_v55 }
 0x83a   :  { %v760_v57 = vpop.xlane.xlu1 %759 }
 0x83b   :  { %v763_v60 = vmul.f32 1.442695, %v761_v56  ;;  %v762_v61 = vsub.f32 %v750_v48, %v760_v57 }
 0x83d   :  { %3450 = vpow2.f32 %v763_v60  ;;  %v765_v62 = vmul.f32 1.442695, %v762_v61 }
 0x83e   :  { %v828_v63 = vpop.permute.xlu1 %827 }
 0x83f   :  { %3452 = vpow2.f32 %v765_v62  ;;  %v833_v0 = vsel %vm343_vm3, %v828_v63, 0 }
 0x840   :  { %3163 = vmatpush3.bf16.msra.mxu0 %v833_v0 }
 0x841   :  { %3174 = vmatprep.subr.bf16.mxu0 %v3548_v15 }
 0x842   :  { %v878_v10 = vpop.permute.xlu1 %877 }
 0x843   :  { %v883_v17 = vsel %vm218_vm2, %v878_v10, 0 }
 0x846   :  { %v928_v16 = vpop.permute.xlu1 %927 }
 0x847   :  { %v3451_v1 = vpop.eup %3450  ;;  %v933_v19 = vsel %vm218_vm2, %v928_v16, 0 }
 0x848   :  { %v767_v2 = vsel %vm218_vm2, %v3451_v1, 0.0 }
 0x849   :  { %v3453_v3 = vpop.eup %3452  ;;  %768 = vadd.xlane.f32.xlu0 %v767_v2 }
 0x84a   :  { %v770_v4 = vsel %vm218_vm2, %v3453_v3, 0.0  ;;  %v926_v21 = vpop.permute.xlu1 %925 }
 0x84d   :  { %771 = vadd.xlane.f32.xlu0 %v770_v4 }
 0x863   :  { %779 = vrot.lane.b32.xlu0 %v3708_v39, %s4303_s27  ;;  %s4319_s27 = smov 24  }
 0x867   :  { %875 = vrot.lane.b32.xlu0 %v3708_v39, %s4299_s29 }
 0x8d6   :  { %v769_v5 = vpop.xlane.xlu0 %768 }
 0x8d7   :  { %3454 = vrcp.f32 %v769_v5 }
 0x8da   :  { %v772_v6 = vpop.xlane.xlu0 %771 }
 0x8db   :  { %3456 = vrcp.f32 %v772_v6 }
 0x8de   :  { %v780_v7 = vpop.permute.xlu0 %779 }
 0x8df   :  { %v785_v8 = vsel %vm343_vm3, %v780_v7, 0  ;;  %v3410_v7 = vld [vmem:[%s4279_s6] sm:$0xff]  }
 0x8e0   :  { %3157 = vmatpush3.bf16.msra.mxu1 %v785_v8  ;;  %v3411_v8 = vld [vmem:[%s4279_s6 + $0x8] sm:$0xff]  }
 0x8e1   :  { %v3455_v9 = vpop.eup %3454  ;;  %3168 = vmatprep.subr.bf16.mxu1 %v3548_v15 }
 0x8e2   :  { %v775_v11 = vmul.f32 %v3455_v9, %v3451_v1  ;;  %v876_v20 = vpop.permute.xlu0 %875 }
 0x8e4   :  { %v777_v12 = vpack.c.bf16 %v775_v11, %v775_v11 }
 0x8e5   :  { %v3457_v13 = vpop.eup %3456 }
 0x8e6   :  { %v776_v14 = vmul.f32 %v3457_v13, %v3453_v3  ;;  %3159 = vmatmul.mubr.msk.bf16.vlgmr.msra.gmra.mrb[20].mxu1 %vm218_vm2, %v777_v12 }
 0x8e7   :  { %3170 = vmatprep.mubr.msk.bf16.mxu1 %vm3549_vm1, %v3548_v15 }
 0x8e8   :  { %v778_v18 = vpack.c.bf16 %v776_v14, %v776_v14 }
 0x8e9   :  { %3169 = vmatpush3.bf16.xpose.msra.mxu1 %v883_v17 }
 0x8ea   :  { %3165 = vmatmul.mubr.msk.bf16.vlgmr.msra.gmra.mrb[24].mxu0 %vm218_vm2, %v778_v18  ;;  %3180 = vmatprep.subr.bf16.mxu1 %v3548_v15 }
 0x8eb   :  { %3175 = vmatpush3.bf16.xpose.msra.mxu0 %v933_v19  ;;  %3176 = vmatprep.mubr.msk.bf16.mxu0 %vm3549_vm1, %v3548_v15 }
 0x8ec   :  { %3186 = vmatprep.subr.bf16.mxu0 %v3548_v15 }
 0x8f0   :  { %3171 = vmatmul.mubr.msk.bf16.vlgmr.msra.gmra.mrb[24].mxu1 %vm218_vm2, %v876_v20 }
 0x8f1   :  { %3182 = vmatprep.mubr.msk.bf16.mxu1 %vm3549_vm1, %v3548_v15 }
 0x8f2   :  { %3177 = vmatmul.mubr.msk.bf16.vlgmr.msra.gmra.mrb[28].mxu0 %vm218_vm2, %v926_v21 }
 0x8f3   :  { %3188 = vmatprep.mubr.msk.bf16.mxu0 %vm3549_vm1, %v3548_v15 }
 0x9b9   :  { %v821_v22 = vpop.f32.mrb[20].mxu1 }
 0x9ba   :  { %v3160_v23 = vpop.f32.mrb[21].mxu1 }
 0x9bb   :  { %v824_v24 = vpop.f32.mrb[22].mxu1 }
 0x9bc   :  { %v3161_v25 = vpop.f32.mrb[23].mxu1 }
 0x9bd   :  { %v869_v26 = vpop.f32.mrb[24].mxu0 }
 0x9be   :  { %v3383_v27 = vpack.i.bf16 %v869_v26, %v821_v22  ;;  %v3166_v29 = vpop.f32.mrb[25].mxu0 }
 0x9bf   :  { %v872_v30 = vpop.f32.mrb[26].mxu0 }
 0x9c0   :  { %v3167_v33 = vpop.f32.mrb[27].mxu0 }
 0x9c3   :  { %v919_v36 = vpop.f32.mrb[24].mxu1 }
 0x9c4   :  { %v920_v37 = vadd.f32 %v919_v36, %v3731_v58  ;;  %v3172_v38 = vpop.f32.mrb[25].mxu1 }
 0x9c5   :  { %v922_v41 = vpop.f32.mrb[26].mxu1  ;;  %v969_v43 = vpop.f32.mrb[28].mxu0 }
 0x9c6   :  { %v970_v45 = vadd.f32 %v969_v43, %v3733_v59  ;;  %v3173_v46 = vpop.f32.mrb[27].mxu1  ;;  %v3178_v47 = vpop.f32.mrb[29].mxu0  ;;  %v975_v48 = vsel %vm218_vm2, %v920_v37, -inf }
 0x9c7   :  { %v972_v49 = vpop.f32.mrb[30].mxu0  ;;  %976 = vmax.xlane.f32.xlu0 %v975_v48 }
 0x9c8   :  { %v3179_v50 = vpop.f32.mrb[31].mxu0  ;;  %v978_v51 = vsel %vm218_vm2, %v970_v45, -inf }
 0x9c9   :  { %979 = vmax.xlane.f32.xlu1 %v978_v51 }
 0x9da   :  { %1047 = vrot.lane.b32.xlu1 %v3710_v42, %s4297_s0 }
 0x9de   :  { %3379 = vrot.lane.b32.xlu1 %v3378_v35, %s4295_s30 }
 0x9e2   :  { %3384 = vrot.lane.b32.xlu1 %v3383_v27, %s4294_s21 }
 0xa54   :  { %v977_v52 = vpop.xlane.xlu0 %976 }
 0xa55   :  { %v981_v53 = vsub.f32 %v920_v37, %v977_v52 }
 0xa56   :  { %v980_v54 = vpop.xlane.xlu1 %979 }
 0xa57   :  { %v983_v55 = vmul.f32 1.442695, %v981_v53  ;;  %v982_v56 = vsub.f32 %v970_v45, %v980_v54 }
 0xa59   :  { %3458 = vpow2.f32 %v983_v55  ;;  %v985_v57 = vmul.f32 1.442695, %v982_v56 }
 0xa5a   :  { %v1048_v60 = vpop.permute.xlu1 %1047 }
 0xa5b   :  { %3460 = vpow2.f32 %v985_v57  ;;  %v1053_v42 = vsel %vm343_vm3, %v1048_v60, 0 }
 0xa5c   :  { %3187 = vmatpush3.bf16.msra.mxu0 %v1053_v42 }
 0xa5d   :  { %3200 = vmatprep.subr.bf16.mxu0 %v3548_v15 }
 0xa5e   :  { %v3380_v19 = vpop.permute.xlu1 %3379 }
 0xa5f   :  { %v3382_v21 = vunpack.i.h.bf16 %v3380_v19  ;;  %v3381_v22 = vunpack.i.l.bf16 %v3380_v19 }
 0xa61   :  { %v1120_v26 = vsel %vm218_vm2, %v3775_v44, %v3382_v21  ;;  %v1119_v27 = vsel %vm218_vm2, %v3773_v40, %v3381_v22  ;;  %v2903_v40 = vld [vmem:[%s4280_s7] ss:$0 sm:$0xff] }
 0xa62   :  { %v3385_v20 = vpop.permute.xlu1 %3384 }
 0xa63   :  { %v3459_v61 = vpop.eup %3458  ;;  %v3387_v23 = vunpack.i.h.bf16 %v3385_v20  ;;  %v3386_v24 = vunpack.i.l.bf16 %v3385_v20 }
 0xa64   :  { %v987_v28 = vsel %vm218_vm2, %v3459_v61, 0.0 }
 0xa65   :  { %v3461_v34 = vpop.eup %3460  ;;  %988 = vadd.xlane.f32.xlu0 %v987_v28  ;;  %v1123_v33 = vsel %vm1121_vm4, %v1120_v26, %v3387_v23  ;;  %v1122_v36 = vsel %vm1121_vm4, %v1119_v27, %v3386_v24 }
 0xa66   :  { %v990_v35 = vsel %vm218_vm2, %v3461_v34, 0.0 }
 0xa69   :  { %991 = vadd.xlane.f32.xlu0 %v990_v35 }
 0xa7f   :  { %999 = vrot.lane.b32.xlu0 %v3708_v39, %s4297_s0 }
 0xaf2   :  { %v989_v62 = vpop.xlane.xlu0 %988 }
 0xaf3   :  { %3462 = vrcp.f32 %v989_v62 }
 0xaf6   :  { %v992_v63 = vpop.xlane.xlu0 %991 }
 0xaf7   :  { %3464 = vrcp.f32 %v992_v63 }
 0xafa   :  { %v1000_v0 = vpop.permute.xlu0 %999 }
 0xafb   :  { %v1005_v1 = vsel %vm343_vm3, %v1000_v0, 0 }
 0xafc   :  { %3181 = vmatpush3.bf16.msra.mxu1 %v1005_v1 }
 0xafd   :  { %v3463_v2 = vpop.eup %3462  ;;  %3192 = vmatprep.subr.bf16.mxu1 %v3548_v15 }
 0xafe   :  { %v995_v3 = vmul.f32 %v3463_v2, %v3459_v61 }
 0xb00   :  { %v997_v4 = vpack.c.bf16 %v995_v3, %v995_v3 }
 0xb01   :  { %v3465_v5 = vpop.eup %3464 }
 0xb02   :  { %v996_v6 = vmul.f32 %v3465_v5, %v3461_v34  ;;  %3183 = vmatmul.mubr.msk.bf16.vlgmr.msra.gmra.mrb[28].mxu1 %vm218_vm2, %v997_v4  ;;  %v3413_v34 = vld [vmem:[%s4283_s10 + $0x8] sm:$0xff]   ;;  %v2907_v5 = vld [vmem:[%s4281_s8] ss:$0 sm:$0xff] }
 0xb03   :  { %3196 = vmatprep.mubr.msk.bf16.mxu1 %vm3549_vm1, %v3548_v15  ;;  %3193 = vmatpush3.bf16.msra.mxu1 %v3410_v7 }
 0xb04   :  { %v998_v39 = vpack.c.bf16 %v996_v6, %v996_v6  ;;  %3194 = vmatprep.subr.bf16.mxu1 %v3548_v15 }
 0xb06   :  { %3189 = vmatmul.mubr.msk.bf16.vlgmr.msra.gmra.mrb[32].mxu0 %vm218_vm2, %v998_v39 }
 0xb07   :  { %3204 = vmatprep.mubr.msk.bf16.mxu0 %vm3549_vm1, %v3548_v15  ;;  %3195 = vmatpush3.bf16.msra.mxu1 %v3411_v8  ;;  %v2908_v8 = vld [vmem:[%s4282_s9] ss:$0 sm:$0xff] }
 0xb08   :  { %3208 = vmatprep.subr.bf16.mxu1 %v3548_v15 }
 0xbd5   :  { %v1041_v9 = vpop.f32.mrb[28].mxu1 }
 0xbd6   :  { %v3184_v10 = vpop.f32.mrb[29].mxu1 }
 0xbd7   :  { %v1044_v11 = vpop.f32.mrb[30].mxu1 }
 0xbd8   :  { %v3185_v12 = vpop.f32.mrb[31].mxu1 }
 0xbd9   :  { %v1089_v13 = vpop.f32.mrb[32].mxu0 }
 0xbda   :  { %v3388_v14 = vpack.i.bf16 %v1089_v13, %v1041_v9  ;;  %v3190_v16 = vpop.f32.mrb[33].mxu0  ;;  %v3414_v13 = vld [vmem:[%s4285_s12] sm:$0xff]  }
 0xbdb   :  { %v1092_v17 = vpop.f32.mrb[34].mxu0  ;;  %v3416_v16 = vld [vmem:[%s4285_s12 + $0x10] sm:$0xff]  }
 0xbdc   :  { %v3191_v18 = vpop.f32.mrb[35].mxu0  ;;  %3389 = vrot.lane.b32.xlu0 %v3388_v14, %s4296_s1  ;;  %v3415_v14 = vld [vmem:[%s4285_s12 + $0x8] sm:$0xff]   ;;  %v3417_v17 = vld [vmem:[%s4285_s12 + $0x18] sm:$0xff]  }
 0xbdd   :  { %v2909_v18 = vld [vmem:[%s4284_s11] ss:$0 sm:$0xff] }
 0xc4e   :  { %v3390_v25 = vpop.permute.xlu0 %3389 }
 0xc4f   :  { %v3392_v29 = vunpack.i.h.bf16 %v3390_v25  ;;  %v3391_v30 = vunpack.i.l.bf16 %v3390_v25 }
 0xc51   :  { %v1126_v37 = vsel %vm1124_vm5, %v1123_v33, %v3392_v29  ;;  %v1125_v38 = vsel %vm1124_vm5, %v1122_v36, %v3391_v30 }
 0xc52   :  { %v1127_v41 = vpack.c.bf16 %v1126_v37, %v1125_v38 }
 0xc54   :  { %3197 = vmatmul.mubr.msk.bf16.vlgmr.msra.gmra.mrb[32].mxu1 %vm91_vm0, %v1127_v41 }
 0xc55   :  { %3216 = vmatprep.mubr.msk.bf16.mxu1 %vm3549_vm1, %v3548_v15  ;;  %3209 = vmatpush3.bf16.msra.mxu1 %v3414_v13 }
 0xc56   :  { %3210 = vmatprep.subr.bf16.mxu1 %v3548_v15 }
 0xc59   :  { %3211 = vmatpush3.bf16.msra.mxu1 %v3415_v14 }
 0xc5a   :  { %3212 = vmatprep.subr.bf16.mxu1 %v3548_v15 }
 0xc5d   :  { %3213 = vmatpush3.bf16.msra.mxu1 %v3416_v16  ;;  %v2920_v16 = vld [vmem:[%s4288_s15] ss:$0 sm:$0xff] }
 0xc5e   :  { %3214 = vmatprep.subr.bf16.mxu1 %v3548_v15 }
 0xc61   :  { %3215 = vmatpush3.bf16.msra.mxu1 %v3417_v17 }
 0xc62   :  { %3234 = vmatprep.subr.bf16.mxu1 %v3548_v15 }
 0xd27   :  { %v1188_v44 = vpop.f32.mrb[32].mxu1 }
 0xd28   :  { %v1189_v43 = vadd.f32 %v2903_v40, %v1188_v44  ;;  %v3198_v45 = vpop.f32.mrb[33].mxu1 }
 0xd29   :  { %v1191_v46 = vpop.f32.mrb[34].mxu1 }
 0xd2a   :  { %v1192_v47 = vadd.f32 %v2903_v40, %v1191_v46  ;;  %v3199_v48 = vpop.f32.mrb[35].mxu1  ;;  %v1195_v49 = vadd.f32 %v1189_v43, %v3696_v31 }
 0xd2c   :  { %v1199_v50 = vsel %vm91_vm0, %v1195_v49, 0.0  ;;  %v1196_v51 = vadd.f32 %v1192_v47, %v3698_v32  ;;  %v3412_v32 = vld [vmem:[%s4283_s10] sm:$0xff]  }
 0xd2d   :  { %1200 = vadd.xlane.f32.xlu1 %v1199_v50  ;;  %3201 = vmatpush3.bf16.msra.mxu0 %v3412_v32 }
 0xd2e   :  { %v1202_v52 = vsel %vm91_vm0, %v1196_v51, 0.0  ;;  %3202 = vmatprep.subr.bf16.mxu0 %v3548_v15 }
 0xd2f   :  { %1203 = vadd.xlane.f32.xlu0 %v1202_v52 }
 0xd31   :  { %3203 = vmatpush3.bf16.msra.mxu0 %v3413_v34 }
 0xd32   :  { %3220 = vmatprep.subr.bf16.mxu0 %v3548_v15 }
 0xdba   :  { %v1201_v53 = vpop.xlane.xlu1 %1200 }
 0xdbb   :  { %v1205_v54 = vmul.f32 0.03125, %v1201_v53 }
 0xdbc   :  { %v1204_v55 = vpop.xlane.xlu0 %1203 }
 0xdbd   :  { %v1207_v56 = vsub.f32 %v1195_v49, %v1205_v54  ;;  %v1206_v57 = vmul.f32 0.03125, %v1204_v55 }
 0xdbf   :  { %v1208_v60 = vsub.f32 %v1196_v51, %v1206_v57  ;;  %v1209_v42 = vmul.f32 %v1207_v56, %v1207_v56  ;;  %v2913_v51 = vld [vmem:[%s4286_s13] ss:$0 sm:$0xff] }
 0xdc1   :  { %v1211_v61 = vsel %vm91_vm0, %v1209_v42, 0.0  ;;  %v1210_v28 = vmul.f32 %v1208_v60, %v1208_v60 }
 0xdc2   :  { %1212 = vadd.xlane.f32.xlu0 %v1211_v61 }
 0xdc3   :  { %v1214_v31 = vsel %vm91_vm0, %v1210_v28, 0.0 }
 0xdc6   :  { %1215 = vadd.xlane.f32.xlu0 %v1214_v31 }
 0xe4f   :  { %v1213_v35 = vpop.xlane.xlu0 %1212 }
 0xe50   :  { %v1217_v62 = vmul.f32 0.03125, %v1213_v35 }
 0xe52   :  { %v1219_v63 = vadd.f32 1e-12, %v1217_v62 }
 0xe53   :  { %v1216_v0 = vpop.xlane.xlu0 %1215 }
 0xe54   :  { %3466 = vrsqrt.f32 %v1219_v63  ;;  %v1218_v1 = vmul.f32 0.03125, %v1216_v0 }
 0xe56   :  { %v1220_v2 = vadd.f32 1e-12, %v1218_v1 }
 0xe58   :  { %3468 = vrsqrt.f32 %v1220_v2 }
 0xe5e   :  { %v3467_v3 = vpop.eup %3466 }
 0xe5f   :  { %v1223_v4 = vmul.f32 %v3467_v3, %v1207_v56 }
 0xe61   :  { %v1231_v39 = vmul.f32 %v2907_v5, %v1223_v4  ;;  %v3418_v4 = vld [vmem:[%s4277_s4 + $0x10] sm:$0xff]  }
 0xe62   :  { %v3469_v6 = vpop.eup %3468 }
 0xe63   :  { %v1224_v7 = vmul.f32 %v3469_v6, %v1208_v60  ;;  %v1239_v10 = vadd.f32 %v2908_v8, %v1231_v39 }
 0xe65   :  { %v1232_v9 = vmul.f32 %v2907_v5, %v1224_v7  ;;  %v3419_v5 = vld [vmem:[%s4277_s4 + $0x18] sm:$0xff]  }
 0xe67   :  { %v1240_v11 = vadd.f32 %v2908_v8, %v1232_v9 }
 0xe69   :  { %v1241_v12 = vpack.c.bf16 %v1240_v11, %v1239_v10 }
 0xe6b   :  { %3205 = vmatmul.mubr.msk.bf16.vlgmr.msra.gmra.mrb[36].mxu0 %vm91_vm0, %v1241_v12  ;;  %v2919_v12 = vld [vmem:[%s4287_s14] ss:$0 sm:$0xff] }
 0xe6c   :  { %3224 = vmatprep.mubr.msk.bf16.mxu0 %vm3549_vm1, %v3548_v15  ;;  %3221 = vmatpush3.bf16.msra.mxu0 %v3418_v4 }
 0xe6d   :  { %3222 = vmatprep.subr.bf16.mxu0 %v3548_v15 }
 0xe70   :  { %3223 = vmatpush3.bf16.msra.mxu0 %v3419_v5 }
 0xe71   :  { %3228 = vmatprep.subr.bf16.mxu0 %v3548_v15 }
 0xf3e   :  { %v1302_v19 = vpop.f32.mrb[36].mxu0 }
 0xf3f   :  { %v1303_v20 = vadd.f32 %v2909_v18, %v1302_v19  ;;  %v3206_v21 = vpop.f32.mrb[37].mxu0 }
 0xf40   :  { %v1305_v22 = vpop.f32.mrb[38].mxu0 }
 0xf41   :  { %v1311_v23 = vmul.f32 0.044715, %v1303_v20  ;;  %v1306_v24 = vadd.f32 %v2909_v18, %v1305_v22  ;;  %v3207_v25 = vpop.f32.mrb[39].mxu0  ;;  %v1309_v45 = vmul.f32 0.5, %v1303_v20 }
 0xf43   :  { %v1313_v26 = vmul.f32 %v1311_v23, %v1303_v20  ;;  %v1312_v27 = vmul.f32 0.044715, %v1306_v24  ;;  %v1310_v46 = vmul.f32 0.5, %v1306_v24  ;;  %v2926_v23 = vld [vmem:[%s4278_s5 + $0x1] ss:$0 sm:$0xff]  ;;  %s4313_s5 = smov 48  }
 0xf45   :  { %v1315_v29 = vmul.f32 %v1313_v26, %v1303_v20  ;;  %v1314_v30 = vmul.f32 %v1312_v27, %v1306_v24 }
 0xf47   :  { %v1317_v33 = vadd.f32 %v1315_v29, %v1303_v20  ;;  %v1316_v36 = vmul.f32 %v1314_v30, %v1306_v24 }
 0xf49   :  { %v1319_v37 = vmul.f32 0.7978846, %v1317_v33  ;;  %v1318_v38 = vadd.f32 %v1316_v36, %v1306_v24 }
 0xf4b   :  { %3470 = vtanh.f32 %v1319_v37  ;;  %v1320_v41 = vmul.f32 0.7978846, %v1318_v38 }
 0xf4d   :  { %3472 = vtanh.f32 %v1320_v41 }
 0xf55   :  { %v3471_v40 = vpop.eup %3470 }
 0xf56   :  { %v1323_v44 = vadd.f32 1.0, %v3471_v40 }
 0xf57   :  { %v3473_v43 = vpop.eup %3472 }
 0xf58   :  { %v1324_v47 = vadd.f32 1.0, %v3473_v43  ;;  %v1325_v48 = vmul.f32 %v1323_v44, %v1309_v45 }
 0xf5a   :  { %v1326_v49 = vmul.f32 %v1324_v47, %v1310_v46 }
 0xf5c   :  { %v1327_v50 = vpack.c.bf16 %v1326_v49, %v1325_v48 }
 0xf5e   :  { %3217 = vmatmul.mubr.msk.bf16.vlgmr.msra.gmra.mrb[36].mxu1 %vm1367_vm6, %v1327_v50 }
 0xf5f   :  { %3236 = vmatprep.mubr.msk.bf16.mxu1 %vm3549_vm1, %v3548_v15 }
0x1031   :  { %v1405_v52 = vpop.f32.mrb[36].mxu1 }
0x1032   :  { %v1406_v53 = vadd.f32 %v2913_v51, %v1405_v52  ;;  %v3218_v54 = vpop.f32.mrb[37].mxu1 }
0x1033   :  { %v1408_v55 = vpop.f32.mrb[38].mxu1 }
0x1034   :  { %v1409_v56 = vadd.f32 %v2913_v51, %v1408_v55  ;;  %v3219_v57 = vpop.f32.mrb[39].mxu1  ;;  %v1412_v60 = vadd.f32 %v1406_v53, %v1239_v10 }
0x1036   :  { %v1416_v42 = vsel %vm91_vm0, %v1412_v60, 0.0  ;;  %v1413_v61 = vadd.f32 %v1409_v56, %v1240_v11 }
0x1037   :  { %1417 = vadd.xlane.f32.xlu1 %v1416_v42 }
0x1038   :  { %v1419_v28 = vsel %vm91_vm0, %v1413_v61, 0.0 }
0x1039   :  { %1420 = vadd.xlane.f32.xlu0 %v1419_v28 }
0x10c4   :  { %v1418_v31 = vpop.xlane.xlu1 %1417 }
0x10c5   :  { %v1422_v32 = vmul.f32 0.03125, %v1418_v31 }
0x10c6   :  { %v1421_v34 = vpop.xlane.xlu0 %1420 }
0x10c7   :  { %v1424_v35 = vsub.f32 %v1412_v60, %v1422_v32  ;;  %v1423_v62 = vmul.f32 0.03125, %v1421_v34 }
0x10c9   :  { %v1425_v63 = vsub.f32 %v1413_v61, %v1423_v62  ;;  %v1426_v0 = vmul.f32 %v1424_v35, %v1424_v35 }
0x10cb   :  { %v1428_v1 = vsel %vm91_vm0, %v1426_v0, 0.0  ;;  %v1427_v2 = vmul.f32 %v1425_v63, %v1425_v63 }
0x10cc   :  { %1429 = vadd.xlane.f32.xlu1 %v1428_v1 }
0x10cd   :  { %v1431_v3 = vsel %vm91_vm0, %v1427_v2, 0.0 }
0x10ce   :  { %1432 = vadd.xlane.f32.xlu0 %v1431_v3 }
0x1159   :  { %v1430_v6 = vpop.xlane.xlu1 %1429 }
0x115a   :  { %v1434_v39 = vmul.f32 0.03125, %v1430_v6 }
0x115b   :  { %v1433_v7 = vpop.xlane.xlu0 %1432 }
0x115c   :  { %v1436_v8 = vadd.f32 1e-12, %v1434_v39  ;;  %v1435_v9 = vmul.f32 0.03125, %v1433_v7 }
0x115e   :  { %3474 = vrsqrt.f32 %v1436_v8  ;;  %v1437_v10 = vadd.f32 1e-12, %v1435_v9 }
0x1160   :  { %3476 = vrsqrt.f32 %v1437_v10 }
0x1168   :  { %v3475_v11 = vpop.eup %3474 }
0x1169   :  { %v1440_v13 = vmul.f32 %v3475_v11, %v1424_v35 }
0x116a   :  { %v3477_v14 = vpop.eup %3476 }
0x116b   :  { %v1448_v17 = vmul.f32 %v2919_v12, %v1440_v13  ;;  %v1441_v18 = vmul.f32 %v3477_v14, %v1425_v63 }
0x116d   :  { %v1449_v19 = vmul.f32 %v2919_v12, %v1441_v18  ;;  %v3973_v20 = vadd.f32 %v2920_v16, %v1448_v17 }
0x116f   :  { %v3975_v21 = vadd.f32 %v2920_v16, %v1449_v19  ;;  %1458 = vst.msk [vmem:[%s4291_s18] sm:$0xff] %vm91_vm0, %v3973_v20 }
0x1171   :  { %1459 = vst.msk [vmem:[%s4291_s18 + $0x8] sm:$0xff] %vm91_vm0, %v3975_v21  ;;  %v1460_v22 = vpack.c.bf16 %v3975_v21, %v3973_v20 }
0x1173   :  { %3225 = vmatmul.mubr.msk.bf16.vlgmr.msra.gmra.mrb[40].mxu0 %vm91_vm0, %v1460_v22 }
0x1174   :  { %3230 = vmatprep.mubr.msk.bf16.mxu0 %vm3549_vm1, %v3548_v15 }
0x1246   :  { %v1523_v24 = vpop.f32.mrb[40].mxu0 }
0x1247   :  { %v1524_v25 = vadd.f32 %v2926_v23, %v1523_v24  ;;  %v3226_v26 = vpop.f32.mrb[41].mxu0 }
0x1248   :  { %v1526_v27 = vpop.f32.mrb[42].mxu0 }
0x1249   :  { %v3995_v29 = vpack.c.bf16 %v1524_v25, %v1524_v25  ;;  %v1527_v30 = vadd.f32 %v2926_v23, %v1526_v27  ;;  %v3227_v33 = vpop.f32.mrb[43].mxu0 }
0x124b   :  { %v3997_v36 = vpack.c.bf16 %v1527_v30, %v1527_v30  ;;  %1533 = vrot.lane.b32.xlu1 %v3995_v29, %s3550_s20 }
0x124d   :  { %1582 = vrot.lane.b32.xlu0 %v3997_v36, %s3550_s20  ;;  %s4314_s20 = smov 72  }
0x12bd   :  { %v1534_v37 = vpop.permute.xlu1 %1533 }
0x12be   :  { %v1539_v38 = vsel %vm218_vm2, %v1534_v37, 0 }
0x12bf   :  { %3229 = vmatpush3.bf16.xpose.msra.mxu0 %v1539_v38  ;;  %v1583_v41 = vpop.permute.xlu0 %1582 }
0x12c0   :  { %v1588_v40 = vsel %vm218_vm2, %v1583_v41, 0  ;;  %3240 = vmatprep.subr.bf16.mxu0 %v3548_v15 }
0x12c1   :  { %3235 = vmatpush3.bf16.xpose.msra.mxu1 %v1588_v40 }
0x12c2   :  { %3246 = vmatprep.subr.bf16.mxu1 %v3548_v15 }
0x12c6   :  { %3231 = vmatmul.mubr.msk.bf16.vlgmr.msra.gmra.mrb[44].mxu0 %vm218_vm2, %v3995_v29 }
0x12c7   :  { %3242 = vmatprep.mubr.msk.bf16.mxu0 %vm3549_vm1, %v3548_v15 }
0x12c8   :  { %3237 = vmatmul.mubr.msk.bf16.vlgmr.msra.gmra.mrb[40].mxu1 %vm218_vm2, %v3997_v36 }
0x12c9   :  { %3248 = vmatprep.mubr.msk.bf16.mxu1 %vm3549_vm1, %v3548_v15 }
0x1399   :  { %v1575_v44 = vpop.f32.mrb[44].mxu0 }
0x139a   :  { %v1576_v43 = vadd.f32 %v1575_v44, %v3731_v58  ;;  %v3232_v45 = vpop.f32.mrb[45].mxu0 }
0x139b   :  { %v1578_v46 = vpop.f32.mrb[46].mxu0  ;;  %v1624_v47 = vpop.f32.mrb[40].mxu1 }
0x139c   :  { %v1625_v48 = vadd.f32 %v1624_v47, %v3733_v59  ;;  %v3233_v49 = vpop.f32.mrb[47].mxu0  ;;  %v3238_v50 = vpop.f32.mrb[41].mxu1  ;;  %v1630_v51 = vsel %vm218_vm2, %v1576_v43, -inf }
0x139d   :  { %1631 = vmax.xlane.f32.xlu1 %v1630_v51  ;;  %v1627_v52 = vpop.f32.mrb[42].mxu1 }
0x139e   :  { %v3239_v53 = vpop.f32.mrb[43].mxu1  ;;  %v1633_v54 = vsel %vm218_vm2, %v1625_v48, -inf }
0x139f   :  { %1634 = vmax.xlane.f32.xlu0 %v1633_v54 }
0x13ae   :  { %1654 = vrot.lane.b32.xlu1 %v3995_v29, %s3552_s2 }
0x142a   :  { %v1632_v55 = vpop.xlane.xlu1 %1631 }
0x142b   :  { %v1636_v56 = vsub.f32 %v1576_v43, %v1632_v55 }
0x142c   :  { %v1635_v57 = vpop.xlane.xlu0 %1634 }
0x142d   :  { %v1638_v60 = vmul.f32 1.442695, %v1636_v56  ;;  %v1637_v42 = vsub.f32 %v1625_v48, %v1635_v57 }
0x142e   :  { %v1655_v61 = vpop.permute.xlu1 %1654 }
0x142f   :  { %3478 = vpow2.f32 %v1638_v60  ;;  %v1640_v28 = vmul.f32 1.442695, %v1637_v42  ;;  %v1660_v31 = vsel %vm343_vm3, %v1655_v61, 0 }
0x1430   :  { %3241 = vmatpush3.bf16.msra.mxu0 %v1660_v31 }
0x1431   :  { %3480 = vpow2.f32 %v1640_v28  ;;  %3252 = vmatprep.subr.bf16.mxu0 %v3548_v15 }
0x1439   :  { %v3479_v32 = vpop.eup %3478 }
0x143a   :  { %v1642_v34 = vsel %vm218_vm2, %v3479_v32, 0.0 }
0x143b   :  { %v3481_v35 = vpop.eup %3480  ;;  %1643 = vadd.xlane.f32.xlu1 %v1642_v34 }
0x143c   :  { %v1645_v62 = vsel %vm218_vm2, %v3481_v35, 0.0 }
0x143d   :  { %1646 = vadd.xlane.f32.xlu0 %v1645_v62 }
0x144c   :  { %1752 = vrot.lane.b32.xlu1 %v3995_v29, %s3553_s23 }
0x1450   :  { %1802 = vrot.lane.b32.xlu1 %v3997_v36, %s3553_s23  ;;  %s4316_s23 = smov 40  }
0x1453   :  { %1702 = vrot.lane.b32.xlu0 %v3997_v36, %s3552_s2  ;;  %s4315_s2 = smov 104  }
0x1454   :  { %1750 = vrot.lane.b32.xlu1 %v3995_v29, %s3554_s24 }
0x1457   :  { %1800 = vrot.lane.b32.xlu0 %v3997_v36, %s3554_s24  ;;  %s4317_s24 = smov 8  }
0x14c8   :  { %v1644_v63 = vpop.xlane.xlu1 %1643 }
0x14c9   :  { %3482 = vrcp.f32 %v1644_v63 }
0x14ca   :  { %v1647_v0 = vpop.xlane.xlu0 %1646 }
0x14cb   :  { %3484 = vrcp.f32 %v1647_v0 }
0x14cc   :  { %v1753_v3 = vpop.permute.xlu1 %1752 }
0x14cd   :  { %v1758_v9 = vsel %vm218_vm2, %v1753_v3, 0 }
0x14ce   :  { %v1703_v1 = vpop.permute.xlu0 %1702 }
0x14cf   :  { %v1708_v2 = vsel %vm343_vm3, %v1703_v1, 0 }
0x14d0   :  { %3247 = vmatpush3.bf16.msra.mxu1 %v1708_v2  ;;  %v1803_v8 = vpop.permute.xlu1 %1802 }
0x14d1   :  { %3258 = vmatprep.subr.bf16.mxu1 %v3548_v15  ;;  %v1808_v11 = vsel %vm218_vm2, %v1803_v8, 0 }
0x14d2   :  { %v1801_v13 = vpop.permute.xlu0 %1800 }
0x14d3   :  { %v3483_v4 = vpop.eup %3482 }
0x14d4   :  { %v1650_v5 = vmul.f32 %v3483_v4, %v3479_v32  ;;  %v1751_v12 = vpop.permute.xlu1 %1750 }
0x14d5   :  { %v3485_v6 = vpop.eup %3484 }
0x14d6   :  { %v1651_v39 = vmul.f32 %v3485_v6, %v3481_v35  ;;  %v1652_v7 = vpack.c.bf16 %v1650_v5, %v1650_v5 }
0x14d8   :  { %3243 = vmatmul.mubr.msk.bf16.vlgmr.msra.gmra.mrb[48].mxu0 %vm218_vm2, %v1652_v7  ;;  %v1653_v10 = vpack.c.bf16 %v1651_v39, %v1651_v39 }
0x14d9   :  { %3253 = vmatpush3.bf16.xpose.msra.mxu0 %v1758_v9  ;;  %3254 = vmatprep.mubr.msk.bf16.mxu0 %vm3549_vm1, %v3548_v15 }
0x14da   :  { %3249 = vmatmul.mubr.msk.bf16.vlgmr.msra.gmra.mrb[44].mxu1 %vm218_vm2, %v1653_v10  ;;  %3264 = vmatprep.subr.bf16.mxu0 %v3548_v15 }
0x14db   :  { %3259 = vmatpush3.bf16.xpose.msra.mxu1 %v1808_v11  ;;  %3260 = vmatprep.mubr.msk.bf16.mxu1 %vm3549_vm1, %v3548_v15 }
0x14dc   :  { %3270 = vmatprep.subr.bf16.mxu1 %v3548_v15 }
0x14e0   :  { %3255 = vmatmul.mubr.msk.bf16.vlgmr.msra.gmra.mrb[52].mxu0 %vm218_vm2, %v1751_v12 }
0x14e1   :  { %3266 = vmatprep.mubr.msk.bf16.mxu0 %vm3549_vm1, %v3548_v15 }
0x14e2   :  { %3261 = vmatmul.mubr.msk.bf16.vlgmr.msra.gmra.mrb[48].mxu1 %vm218_vm2, %v1801_v13 }
0x14e3   :  { %3272 = vmatprep.mubr.msk.bf16.mxu1 %vm3549_vm1, %v3548_v15 }
0x15ab   :  { %v4053_v14 = vpop.f32.mrb[48].mxu0 }
0x15ac   :  { %v3244_v16 = vpop.f32.mrb[49].mxu0 }
0x15ad   :  { %v1699_v17 = vpop.f32.mrb[50].mxu0  ;;  %v4055_v18 = vpop.f32.mrb[44].mxu1 }
0x15ae   :  { %v3245_v19 = vpop.f32.mrb[51].mxu0  ;;  %v3250_v22 = vpop.f32.mrb[45].mxu1 }
0x15af   :  { %v1747_v23 = vpop.f32.mrb[46].mxu1 }
0x15b0   :  { %v3251_v24 = vpop.f32.mrb[47].mxu1 }
0x15b3   :  { %v1794_v25 = vpop.f32.mrb[52].mxu0 }
0x15b4   :  { %v1795_v26 = vadd.f32 %v1794_v25, %v3731_v58  ;;  %v3256_v27 = vpop.f32.mrb[53].mxu0 }
0x15b5   :  { %v1797_v30 = vpop.f32.mrb[54].mxu0  ;;  %v1844_v33 = vpop.f32.mrb[48].mxu1 }
0x15b6   :  { %v1845_v37 = vadd.f32 %v1844_v33, %v3733_v59  ;;  %v3257_v38 = vpop.f32.mrb[55].mxu0  ;;  %v3262_v41 = vpop.f32.mrb[49].mxu1  ;;  %v1850_v40 = vsel %vm218_vm2, %v1795_v26, -inf }
0x15b7   :  { %1851 = vmax.xlane.f32.xlu1 %v1850_v40  ;;  %v1847_v44 = vpop.f32.mrb[50].mxu1 }
0x15b8   :  { %v3263_v43 = vpop.f32.mrb[51].mxu1  ;;  %v1853_v45 = vsel %vm218_vm2, %v1845_v37, -inf }
0x15b9   :  { %1854 = vmax.xlane.f32.xlu0 %v1853_v45 }
0x15c8   :  { %1874 = vrot.lane.b32.xlu1 %v3995_v29, %s3555_s25 }
0x15cc   :  { %1972 = vrot.lane.b32.xlu1 %v3995_v29, %s3556_s3 }
0x15d0   :  { %2022 = vrot.lane.b32.xlu1 %v3997_v36, %s3556_s3 }
0x15d4   :  { %1970 = vrot.lane.b32.xlu1 %v3995_v29, %s3557_s26 }
0x1644   :  { %v1852_v46 = vpop.xlane.xlu1 %1851 }
0x1645   :  { %v1856_v47 = vsub.f32 %v1795_v26, %v1852_v46 }
0x1646   :  { %v1855_v48 = vpop.xlane.xlu0 %1854 }
0x1647   :  { %v1858_v49 = vmul.f32 1.442695, %v1856_v47  ;;  %v1857_v50 = vsub.f32 %v1845_v37, %v1855_v48 }
0x1648   :  { %v1875_v51 = vpop.permute.xlu1 %1874 }
0x1649   :  { %3486 = vpow2.f32 %v1858_v49  ;;  %v1860_v52 = vmul.f32 1.442695, %v1857_v50  ;;  %v1880_v53 = vsel %vm343_vm3, %v1875_v51, 0 }
0x164a   :  { %3265 = vmatpush3.bf16.msra.mxu0 %v1880_v53 }
0x164b   :  { %3488 = vpow2.f32 %v1860_v52  ;;  %3276 = vmatprep.subr.bf16.mxu0 %v3548_v15 }
0x164c   :  { %v1973_v32 = vpop.permute.xlu1 %1972 }
0x164d   :  { %v1978_v63 = vsel %vm218_vm2, %v1973_v32, 0 }
0x1650   :  { %v2023_v1 = vpop.permute.xlu1 %2022 }
0x1651   :  { %v2028_v3 = vsel %vm218_vm2, %v2023_v1, 0 }
0x1653   :  { %v3487_v54 = vpop.eup %3486 }
0x1654   :  { %v1862_v55 = vsel %vm218_vm2, %v3487_v54, 0.0  ;;  %v1971_v4 = vpop.permute.xlu1 %1970 }
0x1655   :  { %v3489_v56 = vpop.eup %3488  ;;  %1863 = vadd.xlane.f32.xlu0 %v1862_v55 }
0x1656   :  { %v1865_v57 = vsel %vm218_vm2, %v3489_v56, 0.0 }
0x1659   :  { %1866 = vadd.xlane.f32.xlu0 %v1865_v57 }
0x166f   :  { %1922 = vrot.lane.b32.xlu0 %v3997_v36, %s3555_s25  ;;  %s4318_s25 = smov 16  }
0x1673   :  { %2020 = vrot.lane.b32.xlu0 %v3997_v36, %s3557_s26 }
0x16e2   :  { %v1864_v60 = vpop.xlane.xlu0 %1863 }
0x16e3   :  { %3490 = vrcp.f32 %v1864_v60 }
0x16e6   :  { %v1867_v42 = vpop.xlane.xlu0 %1866 }
0x16e7   :  { %3492 = vrcp.f32 %v1867_v42 }
0x16ea   :  { %v1923_v61 = vpop.permute.xlu0 %1922 }
0x16eb   :  { %v1928_v28 = vsel %vm343_vm3, %v1923_v61, 0 }
0x16ec   :  { %3271 = vmatpush3.bf16.msra.mxu1 %v1928_v28 }
0x16ed   :  { %v3491_v31 = vpop.eup %3490  ;;  %3282 = vmatprep.subr.bf16.mxu1 %v3548_v15 }
0x16ee   :  { %v1870_v34 = vmul.f32 %v3491_v31, %v3487_v54  ;;  %v2021_v5 = vpop.permute.xlu0 %2020 }
0x16f0   :  { %v1872_v35 = vpack.c.bf16 %v1870_v34, %v1870_v34 }
0x16f1   :  { %v3493_v62 = vpop.eup %3492 }
0x16f2   :  { %v1871_v0 = vmul.f32 %v3493_v62, %v3489_v56  ;;  %3267 = vmatmul.mubr.msk.bf16.vlgmr.msra.gmra.mrb[56].mxu0 %vm218_vm2, %v1872_v35 }
0x16f3   :  { %3277 = vmatpush3.bf16.xpose.msra.mxu0 %v1978_v63  ;;  %3278 = vmatprep.mubr.msk.bf16.mxu0 %vm3549_vm1, %v3548_v15 }
0x16f4   :  { %v1873_v2 = vpack.c.bf16 %v1871_v0, %v1871_v0  ;;  %3288 = vmatprep.subr.bf16.mxu0 %v3548_v15 }
0x16f6   :  { %3273 = vmatmul.mubr.msk.bf16.vlgmr.msra.gmra.mrb[52].mxu1 %vm218_vm2, %v1873_v2 }
0x16f7   :  { %3283 = vmatpush3.bf16.xpose.msra.mxu1 %v2028_v3  ;;  %3284 = vmatprep.mubr.msk.bf16.mxu1 %vm3549_vm1, %v3548_v15 }
0x16f8   :  { %3294 = vmatprep.subr.bf16.mxu1 %v3548_v15 }
0x16fa   :  { %3279 = vmatmul.mubr.msk.bf16.vlgmr.msra.gmra.mrb[60].mxu0 %vm218_vm2, %v1971_v4 }
0x16fb   :  { %3290 = vmatprep.mubr.msk.bf16.mxu0 %vm3549_vm1, %v3548_v15 }
0x16fe   :  { %3285 = vmatmul.mubr.msk.bf16.vlgmr.msra.gmra.mrb[56].mxu1 %vm218_vm2, %v2021_v5 }
0x16ff   :  { %3296 = vmatprep.mubr.msk.bf16.mxu1 %vm3549_vm1, %v3548_v15 }
0x17c5   :  { %v4095_v6 = vpop.f32.mrb[56].mxu0 }
0x17c6   :  { %v3268_v39 = vpop.f32.mrb[57].mxu0 }
0x17c7   :  { %v1919_v7 = vpop.f32.mrb[58].mxu0 }
0x17c8   :  { %v3269_v8 = vpop.f32.mrb[59].mxu0 }
0x17c9   :  { %v4097_v9 = vpop.f32.mrb[52].mxu1 }
0x17ca   :  { %v3393_v10 = vpack.i.bf16 %v4097_v9, %v4095_v6  ;;  %v3274_v11 = vpop.f32.mrb[53].mxu1 }
0x17cb   :  { %v1967_v12 = vpop.f32.mrb[54].mxu1 }
0x17cc   :  { %v3275_v13 = vpop.f32.mrb[55].mxu1 }
0x17cd   :  { %v2014_v16 = vpop.f32.mrb[60].mxu0 }
0x17ce   :  { %v2015_v17 = vadd.f32 %v2014_v16, %v3731_v58  ;;  %v3280_v19 = vpop.f32.mrb[61].mxu0 }
0x17cf   :  { %v2017_v22 = vpop.f32.mrb[62].mxu0 }
0x17d0   :  { %v3281_v23 = vpop.f32.mrb[63].mxu0  ;;  %v2070_v24 = vsel %vm218_vm2, %v2015_v17, -inf }
0x17d1   :  { %2071 = vmax.xlane.f32.xlu1 %v2070_v24  ;;  %v2064_v25 = vpop.f32.mrb[56].mxu1 }
0x17d2   :  { %v2065_v26 = vadd.f32 %v2064_v25, %v3733_v59  ;;  %v3286_v27 = vpop.f32.mrb[57].mxu1 }
0x17d3   :  { %v2067_v30 = vpop.f32.mrb[58].mxu1 }
0x17d4   :  { %v3287_v33 = vpop.f32.mrb[59].mxu1  ;;  %v2073_v37 = vsel %vm218_vm2, %v2065_v26, -inf }
0x17d5   :  { %2074 = vmax.xlane.f32.xlu0 %v2073_v37 }
0x17e2   :  { %2094 = vrot.lane.b32.xlu1 %v3995_v29, %s4313_s5 }
0x17e6   :  { %2192 = vrot.lane.b32.xlu1 %v3995_v29, %s4314_s20 }
0x17ea   :  { %2242 = vrot.lane.b32.xlu1 %v3997_v36, %s4314_s20 }
0x17ee   :  { %2190 = vrot.lane.b32.xlu1 %v3995_v29, %s4315_s2 }
0x185e   :  { %v2072_v38 = vpop.xlane.xlu1 %2071 }
0x185f   :  { %v2076_v41 = vsub.f32 %v2015_v17, %v2072_v38 }
0x1861   :  { %v2078_v40 = vmul.f32 1.442695, %v2076_v41 }
0x1862   :  { %v2095_v44 = vpop.permute.xlu1 %2094  ;;  %v2075_v43 = vpop.xlane.xlu0 %2074 }
0x1863   :  { %3494 = vpow2.f32 %v2078_v40  ;;  %v2100_v45 = vsel %vm343_vm3, %v2095_v44, 0  ;;  %v2077_v46 = vsub.f32 %v2065_v26, %v2075_v43 }
0x1864   :  { %3289 = vmatpush3.bf16.msra.mxu0 %v2100_v45 }
0x1865   :  { %v2080_v47 = vmul.f32 1.442695, %v2077_v46  ;;  %3300 = vmatprep.subr.bf16.mxu0 %v3548_v15 }
0x1866   :  { %v2193_v57 = vpop.permute.xlu1 %2192 }
0x1867   :  { %3496 = vpow2.f32 %v2080_v47  ;;  %v2198_v28 = vsel %vm218_vm2, %v2193_v57, 0 }
0x186a   :  { %v2243_v32 = vpop.permute.xlu1 %2242 }
0x186b   :  { %v2248_v35 = vsel %vm218_vm2, %v2243_v32, 0 }
0x186d   :  { %v3495_v48 = vpop.eup %3494 }
0x186e   :  { %v2082_v49 = vsel %vm218_vm2, %v3495_v48, 0.0  ;;  %v2191_v62 = vpop.permute.xlu1 %2190 }
0x186f   :  { %2083 = vadd.xlane.f32.xlu0 %v2082_v49 }
0x1871   :  { %v3497_v50 = vpop.eup %3496 }
0x1872   :  { %v2085_v51 = vsel %vm218_vm2, %v3497_v50, 0.0 }
0x1873   :  { %2086 = vadd.xlane.f32.xlu0 %v2085_v51 }
0x1889   :  { %2142 = vrot.lane.b32.xlu0 %v3997_v36, %s4313_s5 }
0x188d   :  { %2240 = vrot.lane.b32.xlu0 %v3997_v36, %s4315_s2 }
0x18fc   :  { %v2084_v52 = vpop.xlane.xlu0 %2083 }
0x18fd   :  { %3498 = vrcp.f32 %v2084_v52  ;;  %v3420_v52 = vld [vmem:[%s4279_s6 + $0x10] sm:$0xff]  }
0x1900   :  { %v2087_v53 = vpop.xlane.xlu0 %2086 }
0x1901   :  { %3500 = vrcp.f32 %v2087_v53  ;;  %v3421_v53 = vld [vmem:[%s4279_s6 + $0x18] sm:$0xff]  }
0x1904   :  { %v2143_v54 = vpop.permute.xlu0 %2142 }
0x1905   :  { %v2148_v55 = vsel %vm343_vm3, %v2143_v54, 0 }
0x1906   :  { %3295 = vmatpush3.bf16.msra.mxu1 %v2148_v55 }
0x1907   :  { %v3499_v56 = vpop.eup %3498  ;;  %3306 = vmatprep.subr.bf16.mxu1 %v3548_v15 }
0x1908   :  { %v2090_v60 = vmul.f32 %v3499_v56, %v3495_v48  ;;  %v2241_v63 = vpop.permute.xlu0 %2240 }
0x190a   :  { %v2092_v42 = vpack.c.bf16 %v2090_v60, %v2090_v60 }
0x190b   :  { %v3501_v61 = vpop.eup %3500 }
0x190c   :  { %v2091_v31 = vmul.f32 %v3501_v61, %v3497_v50  ;;  %3291 = vmatmul.mubr.msk.bf16.vlgmr.msra.gmra.mrb[64].mxu0 %vm218_vm2, %v2092_v42 }
0x190d   :  { %3301 = vmatpush3.bf16.xpose.msra.mxu0 %v2198_v28  ;;  %3302 = vmatprep.mubr.msk.bf16.mxu0 %vm3549_vm1, %v3548_v15 }
0x190e   :  { %v2093_v34 = vpack.c.bf16 %v2091_v31, %v2091_v31  ;;  %3312 = vmatprep.subr.bf16.mxu0 %v3548_v15 }
0x1910   :  { %3297 = vmatmul.mubr.msk.bf16.vlgmr.msra.gmra.mrb[60].mxu1 %vm218_vm2, %v2093_v34 }
0x1911   :  { %3307 = vmatpush3.bf16.xpose.msra.mxu1 %v2248_v35  ;;  %3308 = vmatprep.mubr.msk.bf16.mxu1 %vm3549_vm1, %v3548_v15 }
0x1912   :  { %3318 = vmatprep.subr.bf16.mxu1 %v3548_v15 }
0x1914   :  { %3303 = vmatmul.mubr.msk.bf16.vlgmr.msra.gmra.mrb[68].mxu0 %vm218_vm2, %v2191_v62 }
0x1915   :  { %3314 = vmatprep.mubr.msk.bf16.mxu0 %vm3549_vm1, %v3548_v15 }
0x1918   :  { %3309 = vmatmul.mubr.msk.bf16.vlgmr.msra.gmra.mrb[64].mxu1 %vm218_vm2, %v2241_v63 }
0x1919   :  { %3320 = vmatprep.mubr.msk.bf16.mxu1 %vm3549_vm1, %v3548_v15 }
0x19df   :  { %v2136_v0 = vpop.f32.mrb[64].mxu0 }
0x19e0   :  { %v3292_v1 = vpop.f32.mrb[65].mxu0 }
0x19e1   :  { %v2139_v2 = vpop.f32.mrb[66].mxu0 }
0x19e2   :  { %v3293_v3 = vpop.f32.mrb[67].mxu0 }
0x19e3   :  { %v2184_v4 = vpop.f32.mrb[60].mxu1 }
0x19e4   :  { %v3398_v5 = vpack.i.bf16 %v2184_v4, %v2136_v0  ;;  %v3298_v39 = vpop.f32.mrb[61].mxu1 }
0x19e5   :  { %v2187_v7 = vpop.f32.mrb[62].mxu1 }
0x19e6   :  { %v3299_v8 = vpop.f32.mrb[63].mxu1 }
0x19e7   :  { %v2234_v11 = vpop.f32.mrb[68].mxu0 }
0x19e8   :  { %v2235_v12 = vadd.f32 %v2234_v11, %v3731_v58  ;;  %v3304_v13 = vpop.f32.mrb[69].mxu0 }
0x19e9   :  { %v2237_v16 = vpop.f32.mrb[70].mxu0 }
0x19ea   :  { %v3305_v17 = vpop.f32.mrb[71].mxu0  ;;  %v2290_v19 = vsel %vm218_vm2, %v2235_v12, -inf }
0x19eb   :  { %2291 = vmax.xlane.f32.xlu1 %v2290_v19  ;;  %v2284_v22 = vpop.f32.mrb[64].mxu1 }
0x19ec   :  { %v2285_v23 = vadd.f32 %v2284_v22, %v3733_v59  ;;  %v3310_v24 = vpop.f32.mrb[65].mxu1 }
0x19ed   :  { %v2287_v25 = vpop.f32.mrb[66].mxu1 }
0x19ee   :  { %v3311_v26 = vpop.f32.mrb[67].mxu1  ;;  %v2293_v27 = vsel %vm218_vm2, %v2285_v23, -inf }
0x19ef   :  { %2294 = vmax.xlane.f32.xlu0 %v2293_v27 }
0x19fc   :  { %2314 = vrot.lane.b32.xlu1 %v3995_v29, %s4316_s23 }
0x1a00   :  { %3394 = vrot.lane.b32.xlu1 %v3393_v10, %s4317_s24 }
0x1a04   :  { %3399 = vrot.lane.b32.xlu1 %v3398_v5, %s4318_s25 }
0x1a78   :  { %v2292_v58 = vpop.xlane.xlu1 %2291 }
0x1a79   :  { %v2296_v30 = vsub.f32 %v2235_v12, %v2292_v58 }
0x1a7b   :  { %v2298_v33 = vmul.f32 1.442695, %v2296_v30 }
0x1a7c   :  { %v2315_v59 = vpop.permute.xlu1 %2314  ;;  %v2295_v37 = vpop.xlane.xlu0 %2294 }
0x1a7d   :  { %3502 = vpow2.f32 %v2298_v33  ;;  %v2320_v38 = vsel %vm343_vm3, %v2315_v59, 0  ;;  %v2297_v41 = vsub.f32 %v2285_v23, %v2295_v37 }
0x1a7e   :  { %3313 = vmatpush3.bf16.msra.mxu0 %v2320_v38 }
0x1a7f   :  { %v2300_v40 = vmul.f32 1.442695, %v2297_v41  ;;  %3324 = vmatprep.subr.bf16.mxu0 %v3548_v15 }
0x1a80   :  { %v3395_v32 = vpop.permute.xlu1 %3394 }
0x1a81   :  { %3504 = vpow2.f32 %v2300_v40  ;;  %v3397_v35 = vunpack.i.h.bf16 %v3395_v32  ;;  %v3396_v62 = vunpack.i.l.bf16 %v3395_v32 }
0x1a83   :  { %v2435_v2 = vsel %vm218_vm2, %v4055_v18, %v3397_v35  ;;  %v2434_v3 = vsel %vm218_vm2, %v4053_v14, %v3396_v62  ;;  %v2951_v14 = vld [vmem:[%s4280_s7 + $0x1] ss:$0 sm:$0xff] }
0x1a84   :  { %v3400_v34 = vpop.permute.xlu1 %3399 }
0x1a85   :  { %v3402_v63 = vunpack.i.h.bf16 %v3400_v34  ;;  %v3401_v0 = vunpack.i.l.bf16 %v3400_v34 }
0x1a87   :  { %v3503_v29 = vpop.eup %3502  ;;  %v2437_v39 = vsel %vm1121_vm4, %v2435_v2, %v3402_v63  ;;  %v2436_v7 = vsel %vm1121_vm4, %v2434_v3, %v3401_v0 }
0x1a88   :  { %v2302_v6 = vsel %vm218_vm2, %v3503_v29, 0.0 }
0x1a89   :  { %2303 = vadd.xlane.f32.xlu0 %v2302_v6 }
0x1a8b   :  { %v3505_v9 = vpop.eup %3504 }
0x1a8c   :  { %v2305_v10 = vsel %vm218_vm2, %v3505_v9, 0.0 }
0x1a8d   :  { %2306 = vadd.xlane.f32.xlu0 %v2305_v10 }
0x1aa3   :  { %2362 = vrot.lane.b32.xlu0 %v3997_v36, %s4316_s23 }
0x1b16   :  { %v2304_v44 = vpop.xlane.xlu0 %2303 }
0x1b17   :  { %3506 = vrcp.f32 %v2304_v44 }
0x1b1a   :  { %v2307_v43 = vpop.xlane.xlu0 %2306 }
0x1b1b   :  { %3508 = vrcp.f32 %v2307_v43 }
0x1b1e   :  { %v2363_v45 = vpop.permute.xlu0 %2362 }
0x1b1f   :  { %v2368_v46 = vsel %vm343_vm3, %v2363_v45, 0 }
0x1b20   :  { %3319 = vmatpush3.bf16.msra.mxu1 %v2368_v46 }
0x1b21   :  { %v3507_v47 = vpop.eup %3506  ;;  %3332 = vmatprep.subr.bf16.mxu1 %v3548_v15 }
0x1b22   :  { %v2310_v48 = vmul.f32 %v3507_v47, %v3503_v29  ;;  %v3423_v29 = vld [vmem:[%s4283_s10 + $0x18] sm:$0xff]  }
0x1b24   :  { %v2312_v49 = vpack.c.bf16 %v2310_v48, %v2310_v48  ;;  %v2957_v48 = vld [vmem:[%s4281_s8 + $0x1] ss:$0 sm:$0xff] }
0x1b25   :  { %v3509_v50 = vpop.eup %3508 }
0x1b26   :  { %v2311_v51 = vmul.f32 %v3509_v50, %v3505_v9  ;;  %3315 = vmatmul.mubr.msk.bf16.vlgmr.msra.gmra.mrb[72].mxu0 %vm218_vm2, %v2312_v49 }
0x1b27   :  { %3328 = vmatprep.mubr.msk.bf16.mxu0 %vm3549_vm1, %v3548_v15  ;;  %3325 = vmatpush3.bf16.msra.mxu0 %v3420_v52 }
0x1b28   :  { %v2313_v36 = vpack.c.bf16 %v2311_v51, %v2311_v51  ;;  %3326 = vmatprep.subr.bf16.mxu0 %v3548_v15 }
0x1b2a   :  { %3321 = vmatmul.mubr.msk.bf16.vlgmr.msra.gmra.mrb[68].mxu1 %vm218_vm2, %v2313_v36  ;;  %v2958_v36 = vld [vmem:[%s4282_s9 + $0x1] ss:$0 sm:$0xff] }
0x1b2b   :  { %3336 = vmatprep.mubr.msk.bf16.mxu1 %vm3549_vm1, %v3548_v15  ;;  %3327 = vmatpush3.bf16.msra.mxu0 %v3421_v53 }
0x1b2c   :  { %3340 = vmatprep.subr.bf16.mxu0 %v3548_v15 }
0x1bf9   :  { %v2356_v54 = vpop.f32.mrb[72].mxu0 }
0x1bfa   :  { %v3316_v55 = vpop.f32.mrb[73].mxu0 }
0x1bfb   :  { %v2359_v56 = vpop.f32.mrb[74].mxu0 }
0x1bfc   :  { %v3317_v57 = vpop.f32.mrb[75].mxu0  ;;  %v3424_v56 = vld [vmem:[%s4285_s12 + $0x20] sm:$0xff]  }
0x1bfd   :  { %v2404_v60 = vpop.f32.mrb[68].mxu1  ;;  %v3425_v57 = vld [vmem:[%s4285_s12 + $0x28] sm:$0xff]  }
0x1bfe   :  { %v3403_v42 = vpack.i.bf16 %v2404_v60, %v2356_v54  ;;  %v3322_v61 = vpop.f32.mrb[69].mxu1  ;;  %v3426_v60 = vld [vmem:[%s4285_s12 + $0x30] sm:$0xff]  }
0x1bff   :  { %v2407_v28 = vpop.f32.mrb[70].mxu1  ;;  %v2964_v61 = vld [vmem:[%s4284_s11 + $0x1] ss:$0 sm:$0xff] }
0x1c00   :  { %3404 = vrot.lane.b32.xlu1 %v3403_v42, %s4319_s27  ;;  %v3323_v31 = vpop.f32.mrb[71].mxu1  ;;  %v3427_v42 = vld [vmem:[%s4285_s12 + $0x38] sm:$0xff]  }
0x1c72   :  { %v3405_v1 = vpop.permute.xlu1 %3404 }
0x1c73   :  { %v3407_v4 = vunpack.i.h.bf16 %v3405_v1  ;;  %v3406_v5 = vunpack.i.l.bf16 %v3405_v1 }
0x1c75   :  { %v2439_v8 = vsel %vm1124_vm5, %v2437_v39, %v3407_v4  ;;  %v2438_v11 = vsel %vm1124_vm5, %v2436_v7, %v3406_v5 }
0x1c76   :  { %v2440_v12 = vpack.c.bf16 %v2439_v8, %v2438_v11 }
0x1c78   :  { %3329 = vmatmul.mubr.msk.bf16.vlgmr.msra.gmra.mrb[76].mxu0 %vm91_vm0, %v2440_v12 }
0x1c79   :  { %3348 = vmatprep.mubr.msk.bf16.mxu0 %vm3549_vm1, %v3548_v15  ;;  %3341 = vmatpush3.bf16.msra.mxu0 %v3424_v56 }
0x1c7a   :  { %3342 = vmatprep.subr.bf16.mxu0 %v3548_v15 }
0x1c7d   :  { %3343 = vmatpush3.bf16.msra.mxu0 %v3425_v57 }
0x1c7e   :  { %3344 = vmatprep.subr.bf16.mxu0 %v3548_v15 }
0x1c81   :  { %3345 = vmatpush3.bf16.msra.mxu0 %v3426_v60 }
0x1c82   :  { %3346 = vmatprep.subr.bf16.mxu0 %v3548_v15 }
0x1c85   :  { %3347 = vmatpush3.bf16.msra.mxu0 %v3427_v42 }
0x1d4b   :  { %v2503_v18 = vpop.f32.mrb[76].mxu0 }
0x1d4c   :  { %v2504_v13 = vadd.f32 %v2951_v14, %v2503_v18  ;;  %v3330_v16 = vpop.f32.mrb[77].mxu0 }
0x1d4d   :  { %v2506_v17 = vpop.f32.mrb[78].mxu0 }
0x1d4e   :  { %v2507_v19 = vadd.f32 %v2951_v14, %v2506_v17  ;;  %v3331_v22 = vpop.f32.mrb[79].mxu0  ;;  %v2510_v23 = vadd.f32 %v2504_v13, %v3973_v20 }
0x1d50   :  { %v2516_v24 = vsel %vm91_vm0, %v2510_v23, 0.0  ;;  %v2511_v25 = vadd.f32 %v2507_v19, %v3975_v21  ;;  %v3422_v21 = vld [vmem:[%s4283_s10 + $0x10] sm:$0xff]  }
0x1d51   :  { %2517 = vadd.xlane.f32.xlu0 %v2516_v24  ;;  %3333 = vmatpush3.bf16.msra.mxu1 %v3422_v21 }
0x1d52   :  { %v2519_v26 = vsel %vm91_vm0, %v2511_v25, 0.0  ;;  %3334 = vmatprep.subr.bf16.mxu1 %v3548_v15 }
0x1d53   :  { %2520 = vadd.xlane.f32.xlu1 %v2519_v26 }
0x1d55   :  { %3335 = vmatpush3.bf16.msra.mxu1 %v3423_v29 }
0x1d56   :  { %3352 = vmatprep.subr.bf16.mxu1 %v3548_v15 }
0x1dde   :  { %v2518_v27 = vpop.xlane.xlu0 %2517 }
0x1ddf   :  { %v2522_v58 = vmul.f32 0.03125, %v2518_v27 }
0x1de0   :  { %v2521_v30 = vpop.xlane.xlu1 %2520 }
0x1de1   :  { %v2524_v33 = vsub.f32 %v2510_v23, %v2522_v58  ;;  %v2523_v59 = vmul.f32 0.03125, %v2521_v30  ;;  %v2977_v23 = vld [vmem:[%s4286_s13 + $0x1] ss:$0 sm:$0xff] }
0x1de3   :  { %v2525_v37 = vsub.f32 %v2511_v25, %v2523_v59  ;;  %v2526_v38 = vmul.f32 %v2524_v33, %v2524_v33 }
0x1de5   :  { %v2528_v41 = vsel %vm91_vm0, %v2526_v38, 0.0  ;;  %v2527_v40 = vmul.f32 %v2525_v37, %v2525_v37 }
0x1de6   :  { %2529 = vadd.xlane.f32.xlu0 %v2528_v41 }
0x1de7   :  { %v2531_v20 = vsel %vm91_vm0, %v2527_v40, 0.0 }
0x1dea   :  { %2532 = vadd.xlane.f32.xlu0 %v2531_v20 }
0x1e73   :  { %v2530_v6 = vpop.xlane.xlu0 %2529 }
0x1e74   :  { %v2534_v9 = vmul.f32 0.03125, %v2530_v6 }
0x1e76   :  { %v2536_v10 = vadd.f32 1e-12, %v2534_v9 }
0x1e77   :  { %v2533_v44 = vpop.xlane.xlu0 %2532 }
0x1e78   :  { %3510 = vrsqrt.f32 %v2536_v10  ;;  %v2535_v43 = vmul.f32 0.03125, %v2533_v44 }
0x1e7a   :  { %v2537_v45 = vadd.f32 1e-12, %v2535_v43 }
0x1e7c   :  { %3512 = vrsqrt.f32 %v2537_v45  ;;  %v3428_v45 = vld [vmem:[%s4289_s16] sm:$0xff]  }
0x1e82   :  { %v3511_v46 = vpop.eup %3510 }
0x1e83   :  { %v2540_v47 = vmul.f32 %v3511_v46, %v2524_v33  ;;  %v3429_v46 = vld [vmem:[%s4289_s16 + $0x8] sm:$0xff]  }
0x1e85   :  { %v2548_v50 = vmul.f32 %v2957_v48, %v2540_v47 }
0x1e86   :  { %v3513_v49 = vpop.eup %3512 }
0x1e87   :  { %v2541_v51 = vmul.f32 %v3513_v49, %v2525_v37  ;;  %v2556_v53 = vadd.f32 %v2958_v36, %v2548_v50 }
0x1e89   :  { %v2549_v52 = vmul.f32 %v2957_v48, %v2541_v51 }
0x1e8b   :  { %v2557_v54 = vadd.f32 %v2958_v36, %v2549_v52 }
0x1e8d   :  { %v2558_v55 = vpack.c.bf16 %v2557_v54, %v2556_v53 }
0x1e8f   :  { %3337 = vmatmul.mubr.msk.bf16.vlgmr.msra.gmra.mrb[72].mxu1 %vm91_vm0, %v2558_v55 }
0x1e90   :  { %3356 = vmatprep.mubr.msk.bf16.mxu1 %vm3549_vm1, %v3548_v15  ;;  %3353 = vmatpush3.bf16.msra.mxu1 %v3428_v45 }
0x1e91   :  { %3354 = vmatprep.subr.bf16.mxu1 %v3548_v15  ;;  %v2986_v15 = vld [vmem:[%s4288_s15 + $0x1] ss:$0 sm:$0xff] }
0x1e94   :  { %3355 = vmatpush3.bf16.msra.mxu1 %v3429_v46 }
0x1f62   :  { %v2621_v28 = vpop.f32.mrb[72].mxu1 }
0x1f63   :  { %v2622_v31 = vadd.f32 %v2964_v61, %v2621_v28  ;;  %v3338_v32 = vpop.f32.mrb[73].mxu1 }
0x1f64   :  { %v2624_v34 = vpop.f32.mrb[74].mxu1 }
0x1f65   :  { %v2630_v35 = vmul.f32 0.044715, %v2622_v31  ;;  %v2625_v62 = vadd.f32 %v2964_v61, %v2624_v34  ;;  %v3339_v63 = vpop.f32.mrb[75].mxu1  ;;  %v2628_v18 = vmul.f32 0.5, %v2622_v31 }
0x1f67   :  { %v2632_v0 = vmul.f32 %v2630_v35, %v2622_v31  ;;  %v2631_v1 = vmul.f32 0.044715, %v2625_v62  ;;  %v2629_v13 = vmul.f32 0.5, %v2625_v62 }
0x1f69   :  { %v2634_v2 = vmul.f32 %v2632_v0, %v2622_v31  ;;  %v2633_v3 = vmul.f32 %v2631_v1, %v2625_v62  ;;  %v2989_v0 = vld [vmem:[%s4290_s17] ss:$0 sm:$0xff] }
0x1f6b   :  { %v2636_v4 = vadd.f32 %v2634_v2, %v2622_v31  ;;  %v2635_v5 = vmul.f32 %v2633_v3, %v2625_v62 }
0x1f6d   :  { %v2638_v39 = vmul.f32 0.7978846, %v2636_v4  ;;  %v2637_v7 = vadd.f32 %v2635_v5, %v2625_v62 }
0x1f6f   :  { %3514 = vtanh.f32 %v2638_v39  ;;  %v2639_v8 = vmul.f32 0.7978846, %v2637_v7 }
0x1f71   :  { %3516 = vtanh.f32 %v2639_v8 }
0x1f79   :  { %v3515_v11 = vpop.eup %3514 }
0x1f7a   :  { %v2642_v12 = vadd.f32 1.0, %v3515_v11 }
0x1f7b   :  { %v3517_v14 = vpop.eup %3516 }
0x1f7c   :  { %v2643_v16 = vadd.f32 1.0, %v3517_v14  ;;  %v2644_v17 = vmul.f32 %v2642_v12, %v2628_v18 }
0x1f7e   :  { %v2645_v19 = vmul.f32 %v2643_v16, %v2629_v13 }
0x1f80   :  { %v2646_v22 = vpack.c.bf16 %v2645_v19, %v2644_v17 }
0x1f82   :  { %3349 = vmatmul.mubr.msk.bf16.vlgmr.msra.gmra.mrb[80].mxu0 %vm1367_vm6, %v2646_v22 }
0x2055   :  { %v2725_v24 = vpop.f32.mrb[80].mxu0 }
0x2056   :  { %v2726_v25 = vadd.f32 %v2977_v23, %v2725_v24  ;;  %v3350_v26 = vpop.f32.mrb[81].mxu0 }
0x2057   :  { %v2728_v27 = vpop.f32.mrb[82].mxu0 }
0x2058   :  { %v2732_v58 = vadd.f32 %v2726_v25, %v2556_v53  ;;  %v2729_v30 = vadd.f32 %v2977_v23, %v2728_v27  ;;  %v3351_v33 = vpop.f32.mrb[83].mxu0  ;;  %v2985_v53 = vld [vmem:[%s4287_s14 + $0x1] ss:$0 sm:$0xff] }
0x205a   :  { %v2733_v59 = vadd.f32 %v2729_v30, %v2557_v54  ;;  %v2738_v37 = vsel %vm91_vm0, %v2732_v58, 0.0 }
0x205b   :  { %2739 = vadd.xlane.f32.xlu1 %v2738_v37 }
0x205c   :  { %v2741_v38 = vsel %vm91_vm0, %v2733_v59, 0.0 }
0x205d   :  { %2742 = vadd.xlane.f32.xlu0 %v2741_v38 }
0x20e8   :  { %v2740_v41 = vpop.xlane.xlu1 %2739 }
0x20e9   :  { %v2744_v40 = vmul.f32 0.03125, %v2740_v41 }
0x20ea   :  { %v2743_v20 = vpop.xlane.xlu0 %2742 }
0x20eb   :  { %v2746_v21 = vsub.f32 %v2732_v58, %v2744_v40  ;;  %v2745_v29 = vmul.f32 0.03125, %v2743_v20 }
0x20ed   :  { %v2747_v6 = vsub.f32 %v2733_v59, %v2745_v29  ;;  %v2748_v9 = vmul.f32 %v2746_v21, %v2746_v21 }
0x20ef   :  { %v2750_v10 = vsel %vm91_vm0, %v2748_v9, 0.0  ;;  %v2749_v44 = vmul.f32 %v2747_v6, %v2747_v6 }
0x20f0   :  { %2751 = vadd.xlane.f32.xlu1 %v2750_v10 }
0x20f1   :  { %v2753_v43 = vsel %vm91_vm0, %v2749_v44, 0.0 }
0x20f2   :  { %2754 = vadd.xlane.f32.xlu0 %v2753_v43 }
0x217d   :  { %v2752_v47 = vpop.xlane.xlu1 %2751 }
0x217e   :  { %v2756_v48 = vmul.f32 0.03125, %v2752_v47 }
0x217f   :  { %v2755_v49 = vpop.xlane.xlu0 %2754 }
0x2180   :  { %v2758_v50 = vadd.f32 1e-12, %v2756_v48  ;;  %v2757_v51 = vmul.f32 0.03125, %v2755_v49 }
0x2182   :  { %3518 = vrsqrt.f32 %v2758_v50  ;;  %v2759_v36 = vadd.f32 1e-12, %v2757_v51 }
0x2184   :  { %3520 = vrsqrt.f32 %v2759_v36 }
0x218c   :  { %v3519_v52 = vpop.eup %3518 }
0x218d   :  { %v2762_v54 = vmul.f32 %v3519_v52, %v2746_v21 }
0x218e   :  { %v3521_v55 = vpop.eup %3520 }
0x218f   :  { %v2770_v56 = vmul.f32 %v2985_v53, %v2762_v54  ;;  %v2763_v57 = vmul.f32 %v3521_v55, %v2747_v6 }
0x2191   :  { %v2778_v60 = vadd.f32 %v2986_v15, %v2770_v56  ;;  %v2771_v42 = vmul.f32 %v2985_v53, %v2763_v57 }
0x2193   :  { %2987 = vst.msk [vmem:[%s4291_s18 + $0x10] sm:$0xff] %vm91_vm0, %v2778_v60  ;;  %v2779_v61 = vadd.f32 %v2986_v15, %v2771_v42  ;;  %v2783_v28 = vpack.c.bf16 %v2778_v60, %v2778_v60 }
0x2195   :  { %2988 = vst.msk [vmem:[%s4291_s18 + $0x18] sm:$0xff] %vm91_vm0, %v2779_v61  ;;  %v2784_v31 = vpack.c.bf16 %v2779_v61, %v2779_v61  ;;  %v2798_v34 = vunpack.c.l.b16 %v2783_v28  ;;  %s3565_s18 = smov [#allocation2]  }
0x2196   :  { %s2870_s10 = sshll.u32 %s3565_s18, 4  ;;  %s2871_s10 = int_to_ptr.vmem [resolvable:$true] %s2870_s10 }
0x2197   :  { %v2799_v32 = vunpack.c.l.b16 %v2784_v31  ;;  %s3524_s5 = scalar_lea.vmem %s2871_s10, 32  ;;  %p3529_p1 = scmp.lt.s32.totalorder %s2871_s10, %s2871_s10 }
0x2198   :  { %p3525_p0 = scmp.ne.s32.totalorder %s2871_s10, %s3524_s5  ;;  %p3530_p2 = scmp.lt.s32.totalorder %s3524_s5, %s3524_s5 }
0x2199   :  { %v2800_v35 = vrot.slane %v2799_v32, 7 }
0x219a   :  { %p3531_p3 = por %p3530_p2, %p3529_p1 }
0x219b   :  { %v2802_v62 = vsel %vm2801_vm7, %v2800_v35, %v2798_v34 }
0x219c   :  { %v2803_v63 = vpack.c.b16 %v2802_v62, %v2802_v62  ;;  %p3532_p4 = pnand %p3531_p3, %p3525_p0 }
0x219e   :  { %3357 = vmatmul.mubr.msk.bf16.vlgmr.msra.gmra.mrb[76].mxu1 %vm91_vm0, %v2803_v63 }
0x2271   :  { %v2853_v1 = vpop.f32.mrb[76].mxu1 }
0x2272   :  { %v2854_v2 = vadd.f32 %v2989_v0, %v2853_v1  ;;  %v3358_v3 = vpop.f32.mrb[77].mxu1 }
0x2273   :  { %v2856_v4 = vpop.f32.mrb[78].mxu1 }
0x2274   :  { %3522 = vtanh.f32 %v2854_v2  ;;  %v3359_v5 = vpop.f32.mrb[79].mxu1 }
0x227e   :  { %v3523_v39 = vpop.eup %3522 }
0x227f   :  { %2861 = vst.msk [vmem:[#allocation2] sm:$0x3] %vm2860_vm8, %v3523_v39 }
0x2280   :  { %3535 = shalt.err (!%p3532_p4)
}
0x2281   :  { %s3536_s2 = scalar_lea.hbm %s4292_s19, 32 }
0x2282   :  { %p3537_p5 = scmp.ne.s32.totalorder %s4292_s19, %s3536_s2  ;;  %p3540_p6 = scmp.lt.u32.totalorder %s3536_s2, %s4292_s19 }
0x2284   :  { %p3542_p7 = pnand %p3540_p6, %p3537_p5 }
0x2286   :  { %3545 = shalt.err (!%p3542_p7)
}
0x2287   :  { %2873 = dma.vmem_to_hbm [thread:$0]  %s2871_s10, 32, %s4292_s19, [#allocation3]  }
0x2288   :  { %3546 = dma.done.wait [#allocation3], 32  }
0x2289   :  { %3547 = vsyncadd [#allocation3], 4294967264 }
0x228a   :  { %2879 = vsyncpa [#allocation3], 1 }

</bundles_post_ra>
